<compile_context>
chip_gen: v7x
topology: tpu7x:2x2x1
jax: 0.10.0
libtpu: 0.0.40
codegen_flags: <defaults>
</compile_context>

<pallas_src>
import jax
import jax.numpy as jnp
from jax import lax
from jax.experimental import pallas as pl
from jax.experimental.pallas import tpu as pltpu


def _sigmoid(x):
    return 1.0 / (1.0 + jnp.exp(-x))


def _elu(x):
    # forward-only ELU (alpha=1); clamp the exp argument on the negative branch
    return jnp.where(x > 0, x, jnp.exp(jnp.minimum(x, 0.0)) - 1.0)


def _mix_net_kernel(gate_ref, b3_ref,                 # SMEM scalars
                    esm_ref, aa_ref, allf_ref,        # row-tiled activations
                    w1a_ref, w1b_ref, b1_ref,         # fc1_mix_hhm (split) + bias
                    w2_ref, b2_ref, w3_ref,           # fc2 + bias, fc3 weight row
                    out_ref):
    g = gate_ref[0]                                   # sigmoid(w1) precomputed scalar
    esm = esm_ref[...].astype(jnp.float32)
    aa = aa_ref[...].astype(jnp.float32)
    fusion = esm + g * (aa - esm)                     # == (1-g)*esm + g*aa   (f32)

    cdims = (((1,), (1,)), ((), ()))  # contract activation features vs weight in-dim

    # fc1_mix_hhm(concat([fusion, all_feature], 1))
    #   == fusion @ W1[:, :F1]^T + all_feature @ W1[:, F1:]^T + b1
    h1 = lax.dot_general(fusion.astype(jnp.bfloat16), w1a_ref[...],
                         dimension_numbers=cdims,
                         preferred_element_type=jnp.float32)
    h1 = h1 + lax.dot_general(allf_ref[...].astype(jnp.bfloat16), w1b_ref[...],
                              dimension_numbers=cdims,
                              preferred_element_type=jnp.float32)
    h1 = _elu(h1 + b1_ref[...])                       # (tile_n, 128) f32

    # fc2
    h2 = lax.dot_general(h1.astype(jnp.bfloat16), w2_ref[...],
                         dimension_numbers=cdims,
                         preferred_element_type=jnp.float32)
    h2 = _elu(h2 + b2_ref[...])                       # (tile_n, 64) f32

    # fc3: (1, 64) x (tile_n, 64) contracted over features -> (1, tile_n) lane-dense row
    o = lax.dot_general(w3_ref[...], h2, dimension_numbers=cdims,
                        preferred_element_type=jnp.float32)
    out_ref[...] = _sigmoid(o + b3_ref[0]).astype(out_ref.dtype)


def _choose_tile_n(n):
    """Row-tile heuristic: big mem-bound tiles, but enough grid steps for megacore."""
    if n <= 256:
        return n                       # single full-extent block (always layout-legal)
    # >=256 rows (per-step overhead dominates below), aim for ~4 grid steps
    # (v7x 2-TC sharding + DMA/compute overlap), cap at 1024 (v5e scoped-VMEM safe).
    t = min(1024, max(256, -(-n // 4)))
    return -(-t // 128) * 128          # multiple of 128 keeps (1, tile_n) out block lane-aligned


def mix_net_forward(aa_features, esm_out, all_feature, params, *, tile_n=None):
    """Pallas Mix_net.forward.

    aa_features : (N, F1)
    esm_out     : (1, N, F1)   (squeezed inside, as in the PyTorch module)
    all_feature : (N, F2), F1 + F2 == fc1_mix_hhm.in_features (448)
    params      : dict of nn.Linear-layout weights/biases + scalar gate `w1`
    returns     : (N, 1) f32
    """
    esm = jnp.squeeze(esm_out, axis=0)
    n, f1 = aa_features.shape
    f2 = all_feature.shape[1]
    h1_dim, d_in = params["fc1_mix_hhm_w"].shape
    h2_dim = params["fc2_w"].shape[0]
    assert d_in == f1 + f2

    # Weights in bf16 (halves weight DMA, MXU-friendly); biases stay f32.
    w1a = params["fc1_mix_hhm_w"][:, :f1].astype(jnp.bfloat16)       # (128, F1)
    w1b = params["fc1_mix_hhm_w"][:, f1:].astype(jnp.bfloat16)       # (128, F2)
    b1 = params["fc1_mix_hhm_b"].reshape(1, h1_dim).astype(jnp.float32)
    w2 = params["fc2_w"].astype(jnp.bfloat16)                        # (64, 128)
    b2 = params["fc2_b"].reshape(1, h2_dim).astype(jnp.float32)
    w3 = params["fc3_w"].reshape(1, h2_dim).astype(jnp.float32)      # (1, 64)
    # scalar gate (sigmoid is a trivial scalar op; precompute) + fc3 bias -> SMEM
    gate = jax.nn.sigmoid(params["w1"].reshape(-1)[:1]).astype(jnp.float32)   # (1,)
    b3 = params["fc3_b"].reshape(-1)[:1].astype(jnp.float32)                  # (1,)

    if tile_n is None:
        tile_n = _choose_tile_n(n)
    grid = (pl.cdiv(n, tile_n),)      # no wrapper pad: Pallas masks the ragged block

    out = pl.pallas_call(
        _mix_net_kernel,
        out_shape=jax.ShapeDtypeStruct((1, n), jnp.float32),
        grid=grid,
        in_specs=[
            pl.BlockSpec(memory_space=pltpu.MemorySpace.SMEM),        # sigmoid(w1) gate
            pl.BlockSpec(memory_space=pltpu.MemorySpace.SMEM),        # fc3 bias
            pl.BlockSpec((tile_n, f1), lambda i: (i, 0)),             # esm rows
            pl.BlockSpec((tile_n, f1), lambda i: (i, 0)),             # aa rows
            pl.BlockSpec((tile_n, f2), lambda i: (i, 0)),             # all_feature rows
            pl.BlockSpec((h1_dim, f1), lambda i: (0, 0)),             # W1a (VMEM-resident)
            pl.BlockSpec((h1_dim, f2), lambda i: (0, 0)),             # W1b (VMEM-resident)
            pl.BlockSpec((1, h1_dim), lambda i: (0, 0)),              # b1
            pl.BlockSpec((h2_dim, h1_dim), lambda i: (0, 0)),         # W2 (VMEM-resident)
            pl.BlockSpec((1, h2_dim), lambda i: (0, 0)),              # b2
            pl.BlockSpec((1, h2_dim), lambda i: (0, 0)),              # W3 row
        ],
        out_specs=pl.BlockSpec((1, tile_n), lambda i: (0, i)),        # lane-dense output
        compiler_params=pltpu.CompilerParams(
            dimension_semantics=("parallel",)),
    )(gate, b3, esm, aa_features, all_feature, w1a, w1b, b1, w2, b2, w3)

    return out.reshape(n, 1)


def mix_net_reference(aa_features, esm_out, all_feature, params):
    """Plain-JAX reference mirroring PyTorch Mix_net.forward exactly (f32)."""
    w1 = jax.nn.sigmoid(params["w1"])[0]
    esm = jnp.squeeze(esm_out, axis=0)
    fusion = (1.0 - w1) * esm + w1 * aa_features
    final_input = jnp.concatenate([fusion, all_feature], axis=1)
    h = jax.nn.elu(final_input @ params["fc1_mix_hhm_w"].T + params["fc1_mix_hhm_b"])
    h = jax.nn.elu(h @ params["fc2_w"].T + params["fc2_b"])
    return jax.nn.sigmoid(h @ params["fc3_w"].T + params["fc3_b"])


if __name__ == "__main__":
    key = jax.random.PRNGKey(0)
    ks = jax.random.split(key, 9)

    # N rows; fusion features F1 (esm/aa) + hhm features F2 must sum to 448.
    # N deliberately NOT a tile multiple to exercise the maskless ragged path.
    N, F1, F2 = 300, 320, 128
    H1, H2 = 128, 64

    aa_features = jax.random.normal(ks[0], (N, F1), dtype=jnp.float32)
    esm_out = jax.random.normal(ks[1], (1, N, F1), dtype=jnp.float32)
    all_feature = jax.random.normal(ks[2], (N, F2), dtype=jnp.float32)

    def uinit(k, shape, fan_in):
        b = 1.0 / (fan_in ** 0.5)
        return jax.random.uniform(k, shape, jnp.float32, minval=-b, maxval=b)

    params = dict(
        w1=jnp.array([0.5], dtype=jnp.float32),                       # nn.Parameter([0.5])
        fc1_mix_hhm_w=uinit(ks[3], (H1, F1 + F2), F1 + F2),           # Linear(448, 128)
        fc1_mix_hhm_b=uinit(ks[4], (H1,), F1 + F2),
        fc2_w=uinit(ks[5], (H2, H1), H1),                             # Linear(128, 64)
        fc2_b=uinit(ks[6], (H2,), H1),
        fc3_w=uinit(ks[7], (1, H2), H2),                              # Linear(64, 1)
        fc3_b=uinit(ks[8], (1,), H2),
    )

    out = jax.block_until_ready(mix_net_forward(aa_features, esm_out, all_feature, params))
    ref = jax.block_until_ready(mix_net_reference(aa_features, esm_out, all_feature, params))

    assert out.shape == (N, 1), out.shape
    err = float(jnp.max(jnp.abs(out - ref)))
    assert err < 2e-2, err
    print("KERNEL_OK")
</pallas_src>

<mosaic_0001>
module attributes {stable_mosaic.version = 11 : i64} {
  func.func @_mix_net_kernel(%arg0: i32, %arg1: memref<1xf32, #tpu.memory_space<smem>>, %arg2: memref<1xf32, #tpu.memory_space<smem>>, %arg3: memref<256x320xf32, #tpu.memory_space<vmem>>, %arg4: memref<256x320xf32, #tpu.memory_space<vmem>>, %arg5: memref<256x128xf32, #tpu.memory_space<vmem>>, %arg6: memref<128x320xbf16, #tpu.memory_space<vmem>>, %arg7: memref<128x128xbf16, #tpu.memory_space<vmem>>, %arg8: memref<1x128xf32, #tpu.memory_space<vmem>>, %arg9: memref<64x128xbf16, #tpu.memory_space<vmem>>, %arg10: memref<1x64xf32, #tpu.memory_space<vmem>>, %arg11: memref<1x64xf32, #tpu.memory_space<vmem>>, %arg12: memref<1x256xf32, #tpu.memory_space<vmem>>) attributes {dimension_semantics = [#tpu.dimension_semantics<parallel>], iteration_bounds = array<i64: 2>, scalar_prefetch = 0 : i64, scratch_operands = 0 : i64, tpu.core_type = #tpu.core_type<tc>, window_params = [{transform_indices = @transform_0, window_bounds = array<i64: 1>}, {transform_indices = @transform_1, window_bounds = array<i64: 1>}, {transform_indices = @transform_2, window_bounds = array<i64: 256, 320>}, {transform_indices = @transform_3, window_bounds = array<i64: 256, 320>}, {transform_indices = @transform_4, window_bounds = array<i64: 256, 128>}, {pipeline_mode = #tpu.pipeline_mode<synchronous>, transform_indices = @transform_5, window_bounds = array<i64: 128, 320>}, {pipeline_mode = #tpu.pipeline_mode<synchronous>, transform_indices = @transform_6, window_bounds = array<i64: 128, 128>}, {pipeline_mode = #tpu.pipeline_mode<synchronous>, transform_indices = @transform_7, window_bounds = array<i64: 1, 128>}, {pipeline_mode = #tpu.pipeline_mode<synchronous>, transform_indices = @transform_8, window_bounds = array<i64: 64, 128>}, {pipeline_mode = #tpu.pipeline_mode<synchronous>, transform_indices = @transform_9, window_bounds = array<i64: 1, 64>}, {pipeline_mode = #tpu.pipeline_mode<synchronous>, transform_indices = @transform_10, window_bounds = array<i64: 1, 64>}, {transform_indices = @transform_11, window_bounds = array<i64: 1, 256>}]} {
    %c0 = arith.constant 0 : index
    %0 = memref.load %arg1[%c0] : memref<1xf32, #tpu.memory_space<smem>>
    %c0_0 = arith.constant 0 : index
    %c0_1 = arith.constant 0 : index
    %1 = vector.load %arg3[%c0_0, %c0_1] : memref<256x320xf32, #tpu.memory_space<vmem>>, vector<256x320xf32>
    %c0_2 = arith.constant 0 : index
    %c0_3 = arith.constant 0 : index
    %2 = vector.load %arg4[%c0_2, %c0_3] : memref<256x320xf32, #tpu.memory_space<vmem>>, vector<256x320xf32>
    %3 = arith.subf %2, %1 : vector<256x320xf32>
    %4 = vector.broadcast %0 : f32 to vector<256x320xf32>
    %5 = arith.mulf %4, %3 : vector<256x320xf32>
    %6 = arith.addf %1, %5 : vector<256x320xf32>
    %7 = arith.truncf %6 : vector<256x320xf32> to vector<256x320xbf16>
    %c0_4 = arith.constant 0 : index
    %c0_5 = arith.constant 0 : index
    %8 = vector.load %arg6[%c0_4, %c0_5] : memref<128x320xbf16, #tpu.memory_space<vmem>>, vector<128x320xbf16>
    %cst = arith.constant dense<0.000000e+00> : vector<256x128xf32>
    %9 = tpu.matmul %7, %8, %cst {dimension_numbers = #tpu.dot_dimension_numbers<[1], [1], [0], [0], [0, 0, 1, 0], [], []>} : vector<256x320xbf16>, vector<128x320xbf16>, vector<256x128xf32> -> vector<256x128xf32>
    %c0_6 = arith.constant 0 : index
    %c0_7 = arith.constant 0 : index
    %10 = vector.load %arg5[%c0_6, %c0_7] : memref<256x128xf32, #tpu.memory_space<vmem>>, vector<256x128xf32>
    %11 = arith.truncf %10 : vector<256x128xf32> to vector<256x128xbf16>
    %c0_8 = arith.constant 0 : index
    %c0_9 = arith.constant 0 : index
    %12 = vector.load %arg7[%c0_8, %c0_9] : memref<128x128xbf16, #tpu.memory_space<vmem>>, vector<128x128xbf16>
    %cst_10 = arith.constant dense<0.000000e+00> : vector<256x128xf32>
    %13 = tpu.matmul %11, %12, %cst_10 {dimension_numbers = #tpu.dot_dimension_numbers<[1], [1], [0], [0], [0, 0, 1, 0], [], []>} : vector<256x128xbf16>, vector<128x128xbf16>, vector<256x128xf32> -> vector<256x128xf32>
    %14 = arith.addf %9, %13 : vector<256x128xf32>
    %c0_11 = arith.constant 0 : index
    %c0_12 = arith.constant 0 : index
    %15 = vector.load %arg8[%c0_11, %c0_12] : memref<1x128xf32, #tpu.memory_space<vmem>>, vector<1x128xf32>
    %16 = vector.broadcast %15 : vector<1x128xf32> to vector<256x128xf32>
    %17 = arith.addf %14, %16 : vector<256x128xf32>
    %cst_13 = arith.constant 0.000000e+00 : f32
    %18 = vector.broadcast %cst_13 : f32 to vector<256x128xf32>
    %19 = arith.cmpf ogt, %17, %18 : vector<256x128xf32>
    %cst_14 = arith.constant 0.000000e+00 : f32
    %20 = vector.broadcast %cst_14 : f32 to vector<256x128xf32>
    %21 = arith.minimumf %17, %20 : vector<256x128xf32>
    %22 = math.exp %21 : vector<256x128xf32>
    %cst_15 = arith.constant 1.000000e+00 : f32
    %23 = vector.broadcast %cst_15 : f32 to vector<256x128xf32>
    %24 = arith.subf %22, %23 : vector<256x128xf32>
    %25 = arith.select %19, %17, %24 : vector<256x128xi1>, vector<256x128xf32>
    %26 = arith.truncf %25 : vector<256x128xf32> to vector<256x128xbf16>
    %c0_16 = arith.constant 0 : index
    %c0_17 = arith.constant 0 : index
    %27 = vector.load %arg9[%c0_16, %c0_17] : memref<64x128xbf16, #tpu.memory_space<vmem>>, vector<64x128xbf16>
    %cst_18 = arith.constant dense<0.000000e+00> : vector<256x64xf32>
    %28 = tpu.matmul %26, %27, %cst_18 {dimension_numbers = #tpu.dot_dimension_numbers<[1], [1], [0], [0], [0, 0, 1, 0], [], []>} : vector<256x128xbf16>, vector<64x128xbf16>, vector<256x64xf32> -> vector<256x64xf32>
    %c0_19 = arith.constant 0 : index
    %c0_20 = arith.constant 0 : index
    %29 = vector.load %arg10[%c0_19, %c0_20] : memref<1x64xf32, #tpu.memory_space<vmem>>, vector<1x64xf32>
    %30 = vector.broadcast %29 : vector<1x64xf32> to vector<256x64xf32>
    %31 = arith.addf %28, %30 : vector<256x64xf32>
    %cst_21 = arith.constant 0.000000e+00 : f32
    %32 = vector.broadcast %cst_21 : f32 to vector<256x64xf32>
    %33 = arith.cmpf ogt, %31, %32 : vector<256x64xf32>
    %cst_22 = arith.constant 0.000000e+00 : f32
    %34 = vector.broadcast %cst_22 : f32 to vector<256x64xf32>
    %35 = arith.minimumf %31, %34 : vector<256x64xf32>
    %36 = math.exp %35 : vector<256x64xf32>
    %cst_23 = arith.constant 1.000000e+00 : f32
    %37 = vector.broadcast %cst_23 : f32 to vector<256x64xf32>
    %38 = arith.subf %36, %37 : vector<256x64xf32>
    %39 = arith.select %33, %31, %38 : vector<256x64xi1>, vector<256x64xf32>
    %c0_24 = arith.constant 0 : index
    %c0_25 = arith.constant 0 : index
    %40 = vector.load %arg11[%c0_24, %c0_25] : memref<1x64xf32, #tpu.memory_space<vmem>>, vector<1x64xf32>
    %cst_26 = arith.constant dense<0.000000e+00> : vector<1x256xf32>
    %41 = tpu.matmul %40, %39, %cst_26 {dimension_numbers = #tpu.dot_dimension_numbers<[1], [1], [0], [0], [0, 0, 1, 0], [], []>} : vector<1x64xf32>, vector<256x64xf32>, vector<1x256xf32> -> vector<1x256xf32>
    %c0_27 = arith.constant 0 : index
    %42 = memref.load %arg2[%c0_27] : memref<1xf32, #tpu.memory_space<smem>>
    %43 = vector.broadcast %42 : f32 to vector<1x256xf32>
    %44 = arith.addf %41, %43 : vector<1x256xf32>
    %cst_28 = arith.constant 0.000000e+00 : f32
    %45 = vector.broadcast %cst_28 : f32 to vector<1x256xf32>
    %46 = arith.subf %45, %44 : vector<1x256xf32>
    %47 = math.exp %46 : vector<1x256xf32>
    %cst_29 = arith.constant 1.000000e+00 : f32
    %48 = vector.broadcast %cst_29 : f32 to vector<1x256xf32>
    %49 = arith.addf %48, %47 : vector<1x256xf32>
    %cst_30 = arith.constant 1.000000e+00 : f32
    %50 = vector.broadcast %cst_30 : f32 to vector<1x256xf32>
    %51 = arith.divf %50, %49 : vector<1x256xf32>
    %c0_31 = arith.constant 0 : index
    %c0_32 = arith.constant 0 : index
    %52 = vector.load %arg12[%c0_31, %c0_32] : memref<1x256xf32, #tpu.memory_space<vmem>>, vector<1x256xf32>
    tpu.vector_store %arg12[%c0_31, %c0_32], %51 {strides = array<i32>} : memref<1x256xf32, #tpu.memory_space<vmem>>, vector<1x256xf32>,
    return
  }
  func.func @transform_0(%arg0: i32) -> i32 {
    %c0_i32 = arith.constant 0 : i32
    %c0_i32_0 = arith.constant 0 : i32
    return %c0_i32 : i32
  }
  func.func @transform_1(%arg0: i32) -> i32 {
    %c0_i32 = arith.constant 0 : i32
    %c0_i32_0 = arith.constant 0 : i32
    return %c0_i32 : i32
  }
  func.func @transform_2(%arg0: i32) -> (i32, i32) {
    %c0_i32 = arith.constant 0 : i32
    %c0_i32_0 = arith.constant 0 : i32
    return %arg0, %c0_i32 : i32, i32
  }
  func.func @transform_3(%arg0: i32) -> (i32, i32) {
    %c0_i32 = arith.constant 0 : i32
    %c0_i32_0 = arith.constant 0 : i32
    return %arg0, %c0_i32 : i32, i32
  }
  func.func @transform_4(%arg0: i32) -> (i32, i32) {
    %c0_i32 = arith.constant 0 : i32
    %c0_i32_0 = arith.constant 0 : i32
    return %arg0, %c0_i32 : i32, i32
  }
  func.func @transform_5(%arg0: i32) -> (i32, i32) {
    %c0_i32 = arith.constant 0 : i32
    %c0_i32_0 = arith.constant 0 : i32
    %c0_i32_1 = arith.constant 0 : i32
    return %c0_i32, %c0_i32_0 : i32, i32
  }
  func.func @transform_6(%arg0: i32) -> (i32, i32) {
    %c0_i32 = arith.constant 0 : i32
    %c0_i32_0 = arith.constant 0 : i32
    %c0_i32_1 = arith.constant 0 : i32
    return %c0_i32, %c0_i32_0 : i32, i32
  }
  func.func @transform_7(%arg0: i32) -> (i32, i32) {
    %c0_i32 = arith.constant 0 : i32
    %c0_i32_0 = arith.constant 0 : i32
    %c0_i32_1 = arith.constant 0 : i32
    return %c0_i32, %c0_i32_0 : i32, i32
  }
  func.func @transform_8(%arg0: i32) -> (i32, i32) {
    %c0_i32 = arith.constant 0 : i32
    %c0_i32_0 = arith.constant 0 : i32
    %c0_i32_1 = arith.constant 0 : i32
    return %c0_i32, %c0_i32_0 : i32, i32
  }
  func.func @transform_9(%arg0: i32) -> (i32, i32) {
    %c0_i32 = arith.constant 0 : i32
    %c0_i32_0 = arith.constant 0 : i32
    %c0_i32_1 = arith.constant 0 : i32
    return %c0_i32, %c0_i32_0 : i32, i32
  }
  func.func @transform_10(%arg0: i32) -> (i32, i32) {
    %c0_i32 = arith.constant 0 : i32
    %c0_i32_0 = arith.constant 0 : i32
    %c0_i32_1 = arith.constant 0 : i32
    return %c0_i32, %c0_i32_0 : i32, i32
  }
  func.func @transform_11(%arg0: i32) -> (i32, i32) {
    %c0_i32 = arith.constant 0 : i32
    %c0_i32_0 = arith.constant 0 : i32
    return %c0_i32, %arg0 : i32, i32
  }
}

</mosaic_0001>

<bundles_post_ra>
// kernel: tpu_custom_call.1
= control target key start
LH: loop header
LB: loop body
LE: loop exit
PB: predicated region body
PF: predicated region fallthrough
CT: control target
= control target key end

     0   :  { %s5453_s0 = inlined_call_operand.<no memory space> [shape: f32[1], index: 0, kind: input, shape index: {}]   ;;  %s5454_s1 = inlined_call_operand.<no memory space> [shape: f32[1], index: 1, kind: input, shape index: {}]   ;;  %s5455_s2 = inlined_call_operand.hbm [shape: f32[300,320], index: 2, kind: input, shape index: {}]   ;;  %s5456_s3 = inlined_call_operand.hbm [shape: f32[300,320], index: 3, kind: input, shape index: {}]   ;;  %s5457_s4 = inlined_call_operand.vmem [shape: f32[300,128], index: 4, kind: input, shape index: {}]   ;;  %s5458_s5 = inlined_call_operand.vmem [shape: bf16[128,320], index: 5, kind: input, shape index: {}]   ;;  %s5459_s6 = inlined_call_operand.vmem [shape: bf16[128,128], index: 6, kind: input, shape index: {}]   ;;  %s5460_s7 = inlined_call_operand.vmem [shape: f32[1,128], index: 7, kind: input, shape index: {}]   ;;  %s5461_s8 = inlined_call_operand.hbm [shape: bf16[64,128], index: 8, kind: input, shape index: {}]   ;;  %s5462_s9 = inlined_call_operand.vmem [shape: f32[1,64], index: 9, kind: input, shape index: {}]   ;;  %s5463_s10 = inlined_call_operand.vmem [shape: f32[1,64], index: 10, kind: input, shape index: {}]   ;;  %s5464_s11 = inlined_call_operand.hbm [shape: f32[1,300], index: 11, kind: output, shape index: {}]  }
   0x1   :  { %5471 = sst [smem:[#allocation18_spill]] %s5455_s2 }
   0x2   :  { %5472 = sst [smem:[#allocation19_spill]] %s5461_s8 }
   0x3   :  { %16 = sst [smem:[#allocation2]] %s5453_s0 }
   0x4   :  { %17 = sst [smem:[#allocation3]] %s5454_s1 }
   0x5   :  { %18 = vsyncpa [#allocation5], 0 }
   0x6   :  { %20 = vsyncpa [#allocation5 + $0x1], 0 }
   0x7   :  { %21 = vsyncpa [#allocation8], 0 }
   0x8   :  { %23 = vsyncpa [#allocation8 + $0x1], 0 }
   0x9   :  { %24 = vsyncpa [#allocation6], 0 }
   0xa   :  { %26 = vsyncpa [#allocation6 + $0x1], 0  ;;  %s3824_s21 = smov 0   ;;  %s3826_s22 = smov 0  }
   0xb   :  { %s3828_s23 = smov 0   ;;  %s3830_s24 = smov 0  }
   0xc LB: > { %s3845_s0 = sadd.s32 4294967295, %s3745_s24   ;;  %s2868_s1 = sadd.s32 4294967294, %s3745_s24   ;;  %s3745_s24 = sphi %s3830_s24, %s5495_s24   ;;  %s3741_s23 = sphi %s3828_s23, %s5499_s23   ;;  %s3737_s22 = sphi %s3826_s22, %s5498_s22   ;;  %s3733_s21 = sphi %s3824_s21, %s5497_s21  }
   0xd   : > { %s3849_s25 = sadd.s32 1, %s3745_s24   ;;  %s81_s26 = sadd.s32 1, %s3741_s23 }
   0xe   : > { %5473 = sst [smem:[#allocation15_spill]] %s3849_s25  ;;  %s78_s27 = ssub.s32 %s3745_s24, %s3849_s25 }
   0xf   : > { %p88_p0 = scmp.ne.s32.totalorder %s3741_s23, %s3737_s22  ;;  %p79_p1 = scmp.eq.s32.totalorder %s78_s27, 0 }
  0x10   : > { %p89_p2 = scmp.eq.s32.totalorder %s3745_s24, 0  ;;  %p94_p3 = scmp.ne.s32.totalorder %s3737_s22, %s3733_s21 }
  0x11   : > { %p5465_p4 = scmp.eq.s32.totalorder %s3845_s0, 0  ;;  %p296_p7 = scmp.eq.s32.totalorder %s3845_s0, 1 }
  0x12   : > { %s3861_s28 = scalar_select %p79_p1, %s3741_s23, %s81_s26  }
  0x13   : > { %p3863_p5 = por %p89_p2, %p88_p0  ;;  %p3869_p6 = por %p5465_p4, %p94_p3 }
  0x14   : > { %5474 = sst [smem:[#allocation16_spill]] %s3861_s28  ;;  %p302_p8 = scmp.eq.s32.totalorder %s2868_s1, 1 }
  0x15   : > { %s5475_s29 = scalar_select %p3863_p5, 1, 0 }
  0x16   : > { %s5476_s30 = scalar_select %p3869_p6, 1, 0 }
  0x17   : > { %p2869_p9 = scmp.ge.s32.totalorder %s3745_s24, 1  ;;  %p309_p10 = scmp.lt.s32.totalorder %s3745_s24, 3 }
  0x18   : > { %p3876_p11 = por %p296_p7, %p88_p0  ;;  %p3880_p12 = por %p302_p8, %p94_p3 }
  0x19   : > { %p3884_p13 = pnand %p2869_p9, %p309_p10  ;;  %s3747_s15 = smov [#allocation9]  }
  0x1a   : > { %s5477_s12 = scalar_select %p3876_p11, 1, 0 }
  0x1b   : > { %s5478_s13 = scalar_select %p3880_p12, 1, 0 }
  0x1c   : > { %s5480_s14 = scalar_select %p3884_p13, 1, 0 }
  0x1d   : > { %5479 = sst [smem:[#allocation17_spill]] %s5478_s13  ;;  %p3356_p1 = pneg %p3884_p13 }
  0x1e   : > { %s336_s16 = sshll.u32 %s3747_s15, 4  ;;  %s5482_s8 = sld [smem:[#allocation19_spill]]  ;;  %s337_s16 = int_to_ptr.vmem [resolvable:$true] %s336_s16 }
  0x1f   : > { %p3892_p2 = pnand %p3356_p1, %p5465_p4 }
  0x21   : > { %p3589_p3 = pneg %p3892_p2 }
  0x24   : > { %s3587_s20 = scalar_lea.hbm %s5482_s8, 512 }
  0x25   : > { %p3588_p0 = scmp.ne.s32.totalorder %s5482_s8, %s3587_s20  ;;  %p3594_p9 = scmp.lt.u32.totalorder %s3587_s20, %s5482_s8 }
  0x27   : > { %p3590_p7 = pnand %p3589_p3, %p3588_p0 }
  0x29   : > { %p3591_p8 = pneg %p3590_p7 }
  0x2b   : > { %p3596_p10 = pnand %p3594_p9, %p3591_p8 }
  0x2d   : > { %3599 = shalt.err (!%p3596_p10)
}
  0x2e   : > { %s3600_s28 = scalar_lea.vmem %s337_s16, 512  ;;  %p3608_p11 = scmp.lt.s32.totalorder %s337_s16, %s337_s16 }
  0x2f   : > { %p3601_p1 = scmp.ne.s32.totalorder %s337_s16, %s3600_s28  ;;  %p3609_p6 = scmp.lt.s32.totalorder %s3600_s28, %s3600_s28 }
  0x31   : > { %p3603_p4 = pnand %p3601_p1, %p3589_p3  ;;  %p3610_p13 = por %p3609_p6, %p3608_p11 }
  0x33   : > { %p3604_p12 = pneg %p3603_p4 }
  0x35   : > { %p3611_p5 = pnand %p3610_p13, %p3604_p12 }
  0x37   : > { %3614 = shalt.err (!%p3611_p5)
}
  0x38   : > { %s3748_s18 = smov 64   ;;  %s3749_s19 = smov 4  }
  0x39   : > { %3359 = dma.hbm_to_vmem [thread:$0]  (!%p3892_p2), %s5482_s8, 512, %s337_s16, [#allocation8], %s3748_s18, %s3748_s18, %s3749_s19  }
  0x3a   : > { %p2871_p0 = scmp.ge.s32.totalorder %s3745_s24, 2 }
  0x3b   : > { %p5483_p4 = scmp.ne.s32.totalorder (!%p2871_p0), %s5475_s29, 0 }
  0x3c   : > { %352 = sbr.rel (%p2871_p0) target bundleno = 146 (0x92), region = 48 }
  0x43   : > { %355 = sbr.rel (!%p5483_p4) target bundleno = 108 (0x6c), region = 52  ;;  %s356_s28 = sand.u32 (%p5483_p4), 1, %s3741_s23  }
  0x44   : > { %s2872_s20 = sshll.u32 (%p5483_p4), %s3745_s24, 5  ;;  %s3344_s27 = smul.u32 (%p5483_p4), 768, %s356_s28 }
  0x45   : > { %s362_s15 = ssub.s32 (%p5483_p4), 38, %s2872_s20  ;;  %s3922_s18 = scalar_lea.sflag (%p5483_p4), [#allocation5], %s356_s28 }
  0x46   : > { %p363_p5 = scmp.lt.s32.totalorder (%p5483_p4), %s362_s15, 32  ;;  %s360_s19 = scalar_lea.vmem (%p5483_p4), [#allocation4], %s3344_s27 }
  0x4a   : > { %s5501_s15 = smov (!%p363_p5, %s362_s15), 32 }
  0x4b   : > { %s3919_s17 = smul.u32 384, %s5501_s15 }
  0x4d   : > { %s368_s16 = ssub.s32 12288, %s3919_s17 }
  0x4e   : > { %369 = vsyncadd %s3922_s18, %s368_s16  ;;  %p2875_p6 = scmp.ne.s32.totalorder %s3919_s17, 0  ;;  %s3345_s1 = smul.u32 12288, %s3745_s24 }
  0x4f   : > { %s375_s26 = sshll.u32 %s360_s19, 4  ;;  %s5484_s2 = sld [smem:[#allocation18_spill]]  ;;  %s3932_s26 = int_to_ptr.vmem [resolvable:$true] %s375_s26 }
  0x55   : > { %s3930_s25 = scalar_lea.hbm %s5484_s2, %s3345_s1  ;;  %s3619_s16 = scalar_lea.hbm %s5484_s2, 14592 }
  0x56   : > { %s3615_s28 = scalar_lea.hbm %s3930_s25, %s3919_s17  ;;  %p3620_p2 = scmp.lt.u32.totalorder %s3930_s25, %s5484_s2 }
  0x57   : > { %p3616_p11 = scmp.ne.s32.totalorder %s3930_s25, %s3615_s28  ;;  %p3621_p3 = scmp.lt.u32.totalorder %s3619_s16, %s3615_s28 }
  0x58   : > { %p3623_p8 = scmp.lt.u32.totalorder %s3615_s28, %s3930_s25 }
  0x59   : > { %p3617_p12 = pnand %p3616_p11, %p2875_p6  ;;  %p3622_p7 = por %p3621_p3, %p3620_p2 }
  0x5b   : > { %p3618_p13 = pneg %p3617_p12  ;;  %p3624_p9 = por %p3623_p8, %p3622_p7 }
  0x5d   : > { %p3625_p10 = pnand %p3624_p9, %p3618_p13 }
  0x5f   : > { %3628 = shalt.err (!%p3625_p10)
}
  0x60   : > { %s3629_s8 = scalar_lea.vmem %s3932_s26, %s3919_s17  ;;  %s3750_s1 = smov [#allocation4]  }
  0x61   : > { %p3630_p1 = scmp.ne.s32.totalorder %s3932_s26, %s3629_s8  ;;  %s3633_s20 = sshll.u32 %s3750_s1, 4  ;;  %s3634_s20 = int_to_ptr.vmem [resolvable:$false] %s3633_s20 }
  0x62   : > { %s3635_s13 = scalar_lea.vmem %s3634_s20, 24576  ;;  %p3636_p11 = scmp.lt.s32.totalorder %s3932_s26, %s3634_s20 }
  0x63   : > { %p3631_p4 = pnand %p3630_p1, %p2875_p6  ;;  %p3637_p12 = scmp.lt.s32.totalorder %s3635_s13, %s3629_s8 }
  0x65   : > { %p3632_p5 = pneg %p3631_p4  ;;  %p3638_p2 = por %p3637_p12, %p3636_p11 }
  0x67   : > { %p3639_p3 = pnand %p3638_p2, %p3632_p5 }
  0x69   : > { %3642 = shalt.err (!%p3639_p3)
}
  0x6a   : > { %s3751_s28 = smov 384   ;;  %s3752_s27 = smov 24  }
  0x6b   : > { %381 = dma.hbm_to_vmem [thread:$0]  (%p2875_p6), %s3930_s25, %s3919_s17, %s3932_s26, %s3922_s18, %s3751_s28, %s3751_s28, %s3752_s27  }
  0x6c PF: > { %p5485_p13 = scmp.ne.s32.totalorder %s5475_s29, 0 }
  0x6d   : > { %s385_s15 = sand.u32 (%p5485_p13), 1, %s3745_s24   ;;  %s387_s16 = sand.u32 (%p5485_p13), 1, %s3741_s23  }
  0x6e   : > { %384 = sbr.rel (!%p5485_p13) target bundleno = 146 (0x92), region = 56  ;;  %s2879_s8 = sshll.u32 (%p5485_p13), %s3745_s24, 5 }
  0x6f   : > { %s3346_s19 = smul.u32 (%p5485_p13), 768, %s387_s16  ;;  %s391_s1 = ssub.s32 (%p5485_p13), 38, %s2879_s8 }
  0x70   : > { %p392_p7 = scmp.lt.s32.totalorder (%p5485_p13), %s391_s1, 32  ;;  %s3967_s2 = scalar_lea.sflag (%p5485_p13), [#allocation8], %s385_s15 }
  0x71   : > { %s389_s25 = scalar_lea.vmem (%p5485_p13), [#allocation7], %s3346_s19 }
  0x75   : > { %s5503_s1 = smov (!%p392_p7, %s391_s1), 32 }
  0x76   : > { %s3964_s20 = smul.u32 384, %s5503_s1 }
  0x78   : > { %s397_s13 = ssub.s32 12288, %s3964_s20 }
  0x79   : > { %398 = vsyncadd %s3967_s2, %s397_s13  ;;  %p2882_p6 = scmp.ne.s32.totalorder %s3964_s20, 0  ;;  %s3347_s29 = smul.u32 12288, %s3745_s24 }
  0x7a   : > { %s404_s17 = sshll.u32 %s389_s25, 4  ;;  %s3647_s19 = scalar_lea.hbm %s5456_s3, 14592  ;;  %s3977_s17 = int_to_ptr.vmem [resolvable:$true] %s404_s17 }
  0x7b   : > { %s3975_s28 = scalar_lea.hbm %s5456_s3, %s3347_s29 }
  0x7c   : > { %s3643_s27 = scalar_lea.hbm %s3975_s28, %s3964_s20  ;;  %p3648_p1 = scmp.lt.u32.totalorder %s3975_s28, %s5456_s3 }
  0x7d   : > { %p3644_p8 = scmp.ne.s32.totalorder %s3975_s28, %s3643_s27  ;;  %p3649_p4 = scmp.lt.u32.totalorder %s3647_s19, %s3643_s27 }
  0x7e   : > { %p3651_p11 = scmp.lt.u32.totalorder %s3643_s27, %s3975_s28 }
  0x7f   : > { %p3645_p9 = pnand %p3644_p8, %p2882_p6  ;;  %p3650_p5 = por %p3649_p4, %p3648_p1 }
  0x81   : > { %p3646_p10 = pneg %p3645_p9  ;;  %p3652_p12 = por %p3651_p11, %p3650_p5 }
  0x83   : > { %p3653_p2 = pnand %p3652_p12, %p3646_p10 }
  0x85   : > { %3656 = shalt.err (!%p3653_p2)
}
  0x86   : > { %s3657_s13 = scalar_lea.vmem %s3977_s17, %s3964_s20  ;;  %s3753_s25 = smov [#allocation7]  }
  0x87   : > { %p3658_p3 = scmp.ne.s32.totalorder %s3977_s17, %s3657_s13  ;;  %s3661_s29 = sshll.u32 %s3753_s25, 4  ;;  %s3662_s29 = int_to_ptr.vmem [resolvable:$false] %s3661_s29 }
  0x88   : > { %s3663_s18 = scalar_lea.vmem %s3662_s29, 24576  ;;  %p3664_p8 = scmp.lt.s32.totalorder %s3977_s17, %s3662_s29 }
  0x89   : > { %p3659_p13 = pnand %p3658_p3, %p2882_p6  ;;  %p3665_p9 = scmp.lt.s32.totalorder %s3663_s18, %s3657_s13 }
  0x8b   : > { %p3660_p7 = pneg %p3659_p13  ;;  %p3666_p1 = por %p3665_p9, %p3664_p8 }
  0x8d   : > { %p3667_p4 = pnand %p3666_p1, %p3660_p7 }
  0x8f   : > { %3670 = shalt.err (!%p3667_p4)
}
  0x90   : > { %s3754_s26 = smov 384   ;;  %s3755_s27 = smov 24  }
  0x91   : > { %410 = dma.hbm_to_vmem [thread:$0]  (%p2882_p6), %s3975_s28, %s3964_s20, %s3977_s17, %s3967_s2, %s3754_s26, %s3754_s26, %s3755_s27  }
  0x92 PF: > { %p5486_p10 = scmp.ne.s32.totalorder %s5480_s14, 0 }
  0x93   : > { %s4007_s15 = sand.u32 (!%p5486_p10), 1, %s3737_s22   ;;  %p5487_p5 = scmp.ne.s32.totalorder (!%p5486_p10), %s5476_s30, 0 }
  0x94   : > { %433 = sbr.rel (%p5486_p10) target bundleno = 1151 (0x47f), region = 64  ;;  %s436_s19 = scalar_lea.sflag (!%p5486_p10), [#allocation5], %s4007_s15 }
  0x95   : > { %s3348_s16 = smul.u32 (!%p5486_p10), 768, %s4007_s15 }
  0x97   : > { %s4011_s8 = scalar_lea.vmem (!%p5486_p10), [#allocation4], %s3348_s16 }
  0x9b   : > { %3716 = dma.done.wait (%p5487_p5), %s436_s19, 12288  }
  0x9c   : > { %3718 = vsyncadd (%p5487_p5), %s436_s19, 4294955008  ;;  %s444_s2 = sand.u32 1, %s3845_s0   ;;  %s4018_s20 = scalar_lea.vmem [#allocation7], %s3348_s16 }
  0x9d   : > { %s445_s14 = scalar_lea.sflag [#allocation8], %s444_s2 }
  0x9e   : > { %3720 = dma.done.wait (%p5487_p5), %s445_s14, 12288  }
  0x9f   : > { %3722 = vsyncadd (%p5487_p5), %s445_s14, 4294955008  ;;  %p5488_p6 = scmp.eq.s32.totalorder %s3845_s0, 0 }
  0xa1   : > { %3724 = dma.done.wait (%p5488_p6), [#allocation8], 512   ;;  %p5489_p11 = pmov %p5488_p6 }
  0xa2   : > { %v3407_v0 = vld [vmem:[%s5459_s6] sm:$0xff]   ;;  %s4035_s25 = sshll.u32 %s3845_s0, 5  ;;  %v3411_v3 = vld [vmem:[%s5459_s6 + $0x8] sm:$0xff]   ;;  %v3415_v6 = vld [vmem:[%s5459_s6 + $0x10] sm:$0xff]   ;;  %s537_s29 = sld [smem:[#allocation2]]  ;;  %vm1492_vm0 = vcmask 523264  }
  0xa3   : > { %3726 = vsyncadd (%p5489_p11), [#allocation8], 4294966784  ;;  %v3408_v1 = vld [vmem:[%s5458_s5 + $0x4] ss:$12 sps:$4 sm:$0xff]   ;;  %3152 = vmatprep.subr.bf16.mxu0 %v3407_v0  ;;  %v3410_v2 = vld [vmem:[%s5458_s5] ss:$12 sps:$4 sm:$0xff]  }
  0xa4   : > { %1565 = vmatprep.subr.bf16.mxu1 %v3408_v1  ;;  %3153 = vmatpush3.bf16.xpose.msra.mxu0 %v3407_v0  ;;  %v3412_v4 = vld [vmem:[%s5458_s5 + $0x1c] ss:$12 sps:$4 sm:$0xff]   ;;  %p522_p12 = scmp.lt.s32.totalorder %s4035_s25, 37  ;;  %v3414_v5 = vld [vmem:[%s5458_s5 + $0x18] ss:$12 sps:$4 sm:$0xff]   ;;  %v3431_v33 = vld [vmem:[%s5459_s6 + $0x30] sm:$0xff]  }
  0xa5   : > { %1566 = vmatpush1.bf16.xpose.msra.mxu1 %v3410_v2  ;;  %3154 = vmatprep.subr.bf16.mxu0 %v3411_v3  ;;  %v3416_v7 = vld [vmem:[%s5458_s5 + $0x34] ss:$12 sps:$4 sm:$0xff]   ;;  %v3418_v8 = vld [vmem:[%s5458_s5 + $0x30] ss:$12 sps:$4 sm:$0xff]   ;;  %v3420_v10 = vld [vmem:[%s5458_s5 + $0x4c] ss:$12 sps:$4 sm:$0xff]  }
  0xa6   : > { %1567 = vmatprep.subr.bf16.mxu1 %v3412_v4  ;;  %s523_s28 = scalar_select %p522_p12, %s4035_s25, 37  ;;  %v3419_v9 = vld [vmem:[%s5459_s6 + $0x18] sm:$0xff]   ;;  %v539_v13 = vld [vmem:[%s4011_s8 + $0x8] sm:$0xff]  ;;  %v542_v14 = vld [vmem:[%s4011_s8 + $0x20] sm:$0xff] }
  0xa7   : > { %v635_v16 = vld [vmem:[%s4018_s20 + $0x8] sm:$0xff]  ;;  %v638_v17 = vld [vmem:[%s4018_s20 + $0x20] sm:$0xff]  ;;  %v3434_v35 = vld [vmem:[%s5458_s5 + $0x90] ss:$12 sps:$4 sm:$0xff]   ;;  %s2527_s14 = sld [smem:[#allocation3]]  ;;  %s2888_s17 = sshll.u32 %s4007_s15, 1 }
  0xa8   : > { %s2890_s30 = sshll.u32 %s523_s28, 3  ;;  %v4077_v18 = vstv %s537_s29  ;;  %v731_v19 = vsub.f32 %v635_v16, %v539_v13  ;;  %v734_v20 = vsub.f32 %v638_v17, %v542_v14  ;;  %v3422_v23 = vld [vmem:[%s5458_s5 + $0x48] ss:$12 sps:$4 sm:$0xff]   ;;  %v3423_v24 = vld [vmem:[%s5459_s6 + $0x20] sm:$0xff]   ;;  %v3435_v36 = vld [vmem:[%s5459_s6 + $0x38] sm:$0xff]   ;;  %s504_s28 = scalar_lea.vmem [#allocation10], %s2888_s17 }
  0xa9   : > { %s4063_s19 = scalar_lea.vmem %s5457_s4, %s2890_s30  ;;  %v3424_v25 = vld [vmem:[%s5458_s5 + $0x64] ss:$12 sps:$4 sm:$0xff]   ;;  %v3426_v29 = vld [vmem:[%s5458_s5 + $0x60] ss:$12 sps:$4 sm:$0xff]   ;;  %v3428_v31 = vld [vmem:[%s5458_s5 + $0x7c] ss:$12 sps:$4 sm:$0xff]  }
  0xaa   : > { %v1099_v11 = vld [vmem:[%s4063_s19] sm:$0xff]  ;;  %v1100_v12 = vld [vmem:[%s4063_s19 + $0x8] sm:$0xff]  ;;  %v828_v21 = vmul.f32 %v4077_v18, %v731_v19  ;;  %v831_v22 = vmul.f32 %v4077_v18, %v734_v20  ;;  %v541_v39 = vld [vmem:[%s4011_s8 + $0x18] sm:$0xff]  ;;  %s2735_s1 = scalar_lea.sflag [#allocation6], %s4007_s15  ;;  %p5492_p2 = scmp.ne.s32.totalorder %s5477_s12, 0 }
  0xab   : > { %v1131_v15 = vpack.c.bf16 %v1100_v12, %v1099_v11  ;;  %v3427_v30 = vld [vmem:[%s5459_s6 + $0x28] sm:$0xff]   ;;  %v3430_v32 = vld [vmem:[%s5458_s5 + $0x78] ss:$12 sps:$4 sm:$0xff]   ;;  %v3432_v34 = vld [vmem:[%s5458_s5 + $0x94] ss:$12 sps:$4 sm:$0xff]   ;;  %s3043_s13 = sshll.u32 (%p5492_p2), %s3845_s0, 1 }
  0xac   : > { %3155 = vmatpush3.bf16.xpose.msra.mxu0 %v3411_v3  ;;  %v924_v26 = vadd.f32 %v828_v21, %v539_v13  ;;  %v927_v27 = vadd.f32 %v831_v22, %v542_v14  ;;  %v538_v37 = vld [vmem:[%s4011_s8] sm:$0xff]  ;;  %v3436_v38 = vld [vmem:[%s5458_s5 + $0xac] ss:$12 sps:$4 sm:$0xff]   ;;  %v548_v43 = vld [vmem:[%s4011_s8 + $0x50] sm:$0xff]  ;;  %s2743_s30 = ssub.s32 (%p5492_p2), 3, %s3043_s13 }
  0xad   : > { %1568 = vmatpush1.bf16.xpose.msra.mxu1 %v3414_v5  ;;  %3156 = vmatprep.subr.bf16.mxu0 %v3415_v6  ;;  %v634_v40 = vld [vmem:[%s4018_s20] sm:$0xff]  ;;  %v637_v41 = vld [vmem:[%s4018_s20 + $0x18] sm:$0xff]  ;;  %v644_v45 = vld [vmem:[%s4018_s20 + $0x50] sm:$0xff]  ;;  %p2744_p3 = scmp.lt.s32.totalorder (%p5492_p2), %s2743_s30, 2 }
  0xae   : > { %1569 = vmatprep.subr.bf16.mxu1 %v3416_v7  ;;  %3168 = vmatprep.mubr.bf16.mxu0 %v1131_v15  ;;  %v1020_v28 = vpack.c.bf16 %v927_v27, %v924_v26  ;;  %v545_v42 = vld [vmem:[%s4011_s8 + $0x38] sm:$0xff]  ;;  %v730_v46 = vsub.f32 %v634_v40, %v538_v37  ;;  %v733_v47 = vsub.f32 %v637_v41, %v541_v39  ;;  %v3438_v50 = vld [vmem:[%s5458_s5 + $0xa8] ss:$12 sps:$4 sm:$0xff]   ;;  %v554_v62 = vld [vmem:[%s4011_s8 + $0x80] sm:$0xff] }
  0xaf   : > { %v641_v44 = vld [vmem:[%s4018_s20 + $0x38] sm:$0xff]  ;;  %v740_v49 = vsub.f32 %v644_v45, %v548_v43  ;;  %v544_v51 = vld [vmem:[%s4011_s8 + $0x30] sm:$0xff]  ;;  %v547_v54 = vld [vmem:[%s4011_s8 + $0x48] sm:$0xff] }
  0xb0   : > { %1597 = vmatprep.mubr.bf16.mxu1 %v1020_v28  ;;  %v737_v48 = vsub.f32 %v641_v44, %v545_v42  ;;  %v827_v52 = vmul.f32 %v4077_v18, %v730_v46  ;;  %v830_v53 = vmul.f32 %v4077_v18, %v733_v47  ;;  %v640_v55 = vld [vmem:[%s4018_s20 + $0x30] sm:$0xff]  ;;  %v643_v56 = vld [vmem:[%s4018_s20 + $0x48] sm:$0xff]  ;;  %v650_v63 = vld [vmem:[%s4018_s20 + $0x80] sm:$0xff] }
  0xb1   : > { %v3439_v57 = vld [vmem:[%s5458_s5 + $0x8] ss:$12 sps:$4 sm:$0xff]   ;;  %v837_v59 = vmul.f32 %v4077_v18, %v740_v49  ;;  %v736_v0 = vsub.f32 %v640_v55, %v544_v51  ;;  %v739_v1 = vsub.f32 %v643_v56, %v547_v54  ;;  %v1102_v3 = vld [vmem:[%s4063_s19 + $0x18] sm:$0xff]  ;;  %v3440_v16 = vld [vmem:[%s5458_s5 + $0x20] ss:$12 sps:$4 sm:$0xff]  }
  0xb2   : > { %v834_v58 = vmul.f32 %v4077_v18, %v737_v48  ;;  %v551_v60 = vld [vmem:[%s4011_s8 + $0x68] sm:$0xff]  ;;  %v1101_v2 = vld [vmem:[%s4063_s19 + $0x10] sm:$0xff]  ;;  %v923_v4 = vadd.f32 %v827_v52, %v538_v37  ;;  %v926_v5 = vadd.f32 %v830_v53, %v541_v39  ;;  %v550_v19 = vld [vmem:[%s4011_s8 + $0x60] sm:$0xff]  ;;  %v1542_v21 = vsel %vm1492_vm0, %v3439_v57, 0 }
  0xb3   : > { %v647_v61 = vld [vmem:[%s4018_s20 + $0x68] sm:$0xff]  ;;  %v1132_v12 = vpack.c.bf16 %v1102_v3, %v1101_v2  ;;  %v833_v13 = vmul.f32 %v4077_v18, %v736_v0  ;;  %v836_v14 = vmul.f32 %v4077_v18, %v739_v1  ;;  %v553_v20 = vld [vmem:[%s4011_s8 + $0x78] sm:$0xff]  ;;  %v560_v28 = vld [vmem:[%s4011_s8 + $0xb0] sm:$0xff]  ;;  %v1545_v46 = vsel %vm1492_vm0, %v3440_v16, 0 }
  0xb4   : > { %3157 = vmatpush3.bf16.xpose.msra.mxu0 %v3415_v6  ;;  %v743_v6 = vsub.f32 %v647_v61, %v551_v60  ;;  %v930_v7 = vadd.f32 %v834_v58, %v545_v42  ;;  %v1104_v11 = vld [vmem:[%s4063_s19 + $0x28] sm:$0xff]  ;;  %v1019_v15 = vpack.c.bf16 %v926_v5, %v923_v4  ;;  %v649_v26 = vld [vmem:[%s4018_s20 + $0x78] sm:$0xff]  ;;  %v1107_v41 = vld [vmem:[%s4063_s19 + $0x40] sm:$0xff] }
  0xb5   : > { %1570 = vmatpush1.bf16.xpose.msra.mxu1 %v3418_v8  ;;  %3158 = vmatprep.subr.bf16.mxu0 %v3419_v9  ;;  %v933_v8 = vadd.f32 %v837_v59, %v548_v43  ;;  %v557_v27 = vld [vmem:[%s4011_s8 + $0x98] sm:$0xff]  ;;  %v745_v37 = vsub.f32 %v649_v26, %v553_v20  ;;  %v1108_v42 = vld [vmem:[%s4063_s19 + $0x48] sm:$0xff]  ;;  %v556_v44 = vld [vmem:[%s4011_s8 + $0x90] sm:$0xff] }
  0xb6   : > { %1571 = vmatprep.subr.bf16.mxu1 %v3420_v10  ;;  %v1103_v10 = vld [vmem:[%s4063_s19 + $0x20] sm:$0xff]  ;;  %v840_v17 = vmul.f32 %v4077_v18, %v743_v6  ;;  %v559_v49 = vld [vmem:[%s4011_s8 + $0xa8] sm:$0xff]  ;;  %v1135_v52 = vpack.c.bf16 %v1108_v42, %v1107_v41  ;;  %v1110_v0 = vld [vmem:[%s4063_s19 + $0x58] sm:$0xff] }
  0xb7   : > { %v1133_v22 = vpack.c.bf16 %v1104_v11, %v1103_v10  ;;  %v842_v48 = vmul.f32 %v4077_v18, %v745_v37  ;;  %v563_v56 = vld [vmem:[%s4011_s8 + $0xc8] sm:$0xff]  ;;  %v3441_v58 = vld [vmem:[%s5458_s5 + $0x38] ss:$12 sps:$4 sm:$0xff]   ;;  %v568_v41 = vld [vmem:[%s4011_s8 + $0xf0] sm:$0xff] }
  0xb8   : > { %v566_v59 = vld [vmem:[%s4011_s8 + $0xe0] sm:$0xff]  ;;  %v665_v26 = vld [vmem:[%s4018_s20 + $0xf8] sm:$0xff] }
  0xb9   : > { %v938_v2 = vadd.f32 %v842_v48, %v553_v20  ;;  %v667_v48 = vld [vmem:[%s4018_s20 + $0x108] sm:$0xff] }
  0xbc   : > { %3159 = vmatpush3.bf16.xpose.msra.mxu0 %v3419_v9  ;;  %v746_v9 = vsub.f32 %v650_v63, %v554_v62  ;;  %v1109_v63 = vld [vmem:[%s4063_s19 + $0x50] sm:$0xff] }
  0xbd   : > { %1572 = vmatpush1.bf16.xpose.msra.mxu1 %v3422_v23  ;;  %3160 = vmatprep.subr.bf16.mxu0 %v3423_v24  ;;  %v1023_v23 = vpack.c.bf16 %v933_v8, %v930_v7  ;;  %v1111_v7 = vld [vmem:[%s4063_s19 + $0x60] sm:$0xff]  ;;  %v1112_v8 = vld [vmem:[%s4063_s19 + $0x68] sm:$0xff] }
  0xbe   : > { %1573 = vmatprep.subr.bf16.mxu1 %v3424_v25  ;;  %v646_v25 = vld [vmem:[%s4018_s20 + $0x60] sm:$0xff] }
  0xc4   : > { %3161 = vmatpush3.bf16.xpose.msra.mxu0 %v3423_v24  ;;  %v843_v24 = vmul.f32 %v4077_v18, %v746_v9  ;;  %v1136_v9 = vpack.c.bf16 %v1110_v0, %v1109_v63 }
  0xc5   : > { %1574 = vmatpush1.bf16.xpose.msra.mxu1 %v3426_v29  ;;  %3162 = vmatprep.subr.bf16.mxu0 %v3427_v30  ;;  %v653_v29 = vld [vmem:[%s4018_s20 + $0x98] sm:$0xff] }
  0xc6   : > { %1575 = vmatprep.subr.bf16.mxu1 %v3428_v31  ;;  %v929_v31 = vadd.f32 %v833_v13, %v544_v51  ;;  %v749_v39 = vsub.f32 %v653_v29, %v557_v27  ;;  %v655_v51 = vld [vmem:[%s4018_s20 + $0xa8] sm:$0xff]  ;;  %v3442_v13 = vld [vmem:[%s5458_s5 + $0x50] ss:$12 sps:$4 sm:$0xff]  }
  0xcc   : > { %3163 = vmatpush3.bf16.xpose.msra.mxu0 %v3427_v30  ;;  %v656_v30 = vld [vmem:[%s4018_s20 + $0xb0] sm:$0xff] }
  0xcd   : > { %1576 = vmatpush1.bf16.xpose.msra.mxu1 %v3430_v32  ;;  %3164 = vmatprep.subr.bf16.mxu0 %v3431_v33  ;;  %v932_v32 = vadd.f32 %v836_v14, %v547_v54  ;;  %v752_v40 = vsub.f32 %v656_v30, %v560_v28  ;;  %v846_v54 = vmul.f32 %v4077_v18, %v749_v39  ;;  %v1113_v30 = vld [vmem:[%s4063_s19 + $0x70] sm:$0xff]  ;;  %v1116_v39 = vld [vmem:[%s4063_s19 + $0x88] sm:$0xff] }
  0xce   : > { %1577 = vmatprep.subr.bf16.mxu1 %v3432_v34  ;;  %v1106_v34 = vld [vmem:[%s4063_s19 + $0x38] sm:$0xff] }
  0xcf   : > { %v1022_v45 = vpack.c.bf16 %v932_v32, %v929_v31  ;;  %v849_v55 = vmul.f32 %v4077_v18, %v752_v40  ;;  %v942_v4 = vadd.f32 %v846_v54, %v557_v27  ;;  %v668_v27 = vld [vmem:[%s4018_s20 + $0x110] sm:$0xff]  ;;  %v1114_v31 = vld [vmem:[%s4063_s19 + $0x78] sm:$0xff]  ;;  %v671_v54 = vld [vmem:[%s4018_s20 + $0x128] sm:$0xff] }
  0xd0   : > { %v1138_v40 = vpack.c.bf16 %v1114_v31, %v1113_v30  ;;  %v1124_v30 = vld [vmem:[%s4063_s19 + $0xc8] sm:$0xff] }
  0xd1   : > { %v945_v5 = vadd.f32 %v849_v55, %v560_v28  ;;  %v3443_v55 = vld [vmem:[%s5458_s5 + $0x68] ss:$12 sps:$4 sm:$0xff]  }
  0xd3   : > { %v1029_v20 = vpack.c.bf16 %v945_v5, %v942_v4  ;;  %v1119_v4 = vld [vmem:[%s4063_s19 + $0xa0] sm:$0xff]  ;;  %v1120_v5 = vld [vmem:[%s4063_s19 + $0xa8] sm:$0xff] }
  0xd4   : > { %3165 = vmatpush3.bf16.xpose.msra.mxu0 %v3431_v33  ;;  %v1105_v33 = vld [vmem:[%s4063_s19 + $0x30] sm:$0xff] }
  0xd5   : > { %1578 = vmatpush1.bf16.xpose.msra.mxu1 %v3434_v35  ;;  %3166 = vmatprep.subr.bf16.mxu0 %v3435_v36  ;;  %v936_v35 = vadd.f32 %v840_v17, %v551_v60  ;;  %v1134_v43 = vpack.c.bf16 %v1106_v34, %v1105_v33  ;;  %v662_v60 = vld [vmem:[%s4018_s20 + $0xe0] sm:$0xff]  ;;  %v1548_v17 = vsel %vm1492_vm0, %v3441_v58, 0 }
  0xd6   : > { %1579 = vmatprep.subr.bf16.mxu1 %v3436_v38  ;;  %v939_v38 = vadd.f32 %v843_v24, %v554_v62  ;;  %v751_v62 = vsub.f32 %v655_v51, %v559_v49  ;;  %v758_v6 = vsub.f32 %v662_v60, %v566_v59  ;;  %v569_v24 = vld [vmem:[%s4011_s8 + $0xf8] sm:$0xff]  ;;  %v1117_v60 = vld [vmem:[%s4063_s19 + $0x90] sm:$0xff] }
  0xd8   : > { %v1026_v53 = vpack.c.bf16 %v939_v38, %v936_v35  ;;  %v848_v11 = vmul.f32 %v4077_v18, %v751_v62  ;;  %v1115_v38 = vld [vmem:[%s4063_s19 + $0x80] sm:$0xff] }
  0xda   : > { %v944_v29 = vadd.f32 %v848_v11, %v559_v49  ;;  %v1139_v49 = vpack.c.bf16 %v1116_v39, %v1115_v38  ;;  %v4256_v38 = vld [vmem:[%s4011_s8 + $0x168] sm:$0xff]  ;;  %v676_v39 = vld [vmem:[%s4018_s20 + $0x150] sm:$0xff] }
  0xdc   : > { %3167 = vmatpush3.bf16.xpose.msra.mxu0 %v3435_v36  ;;  %v742_v36 = vsub.f32 %v646_v25, %v550_v19  ;;  %v572_v25 = vld [vmem:[%s4011_s8 + $0x110] sm:$0xff] }
  0xdd   : > { %1580 = vmatpush1.bf16.xpose.msra.mxu1 %v3438_v50  ;;  %3336 = vmatprep.subr.msk.bf16.mxu0 %vm1492_vm0, %v3439_v57  ;;  %v652_v50 = vld [vmem:[%s4018_s20 + $0x90] sm:$0xff]  ;;  %v659_v57 = vld [vmem:[%s4018_s20 + $0xc8] sm:$0xff]  ;;  %v764_v37 = vsub.f32 %v668_v27, %v572_v25 }
  0xde   : > { %v839_v47 = vmul.f32 %v4077_v18, %v742_v36  ;;  %v748_v61 = vsub.f32 %v652_v50, %v556_v44  ;;  %v755_v3 = vsub.f32 %v659_v57, %v563_v56  ;;  %v761_v36 = vsub.f32 %v665_v26, %v569_v24  ;;  %v674_v57 = vld [vmem:[%s4018_s20 + $0x140] sm:$0xff] }
  0xe0   : > { %v935_v1 = vadd.f32 %v839_v47, %v550_v19  ;;  %v845_v10 = vmul.f32 %v4077_v18, %v748_v61  ;;  %v852_v14 = vmul.f32 %v4077_v18, %v755_v3  ;;  %v1137_v19 = vpack.c.bf16 %v1112_v8, %v1111_v7  ;;  %v664_v47 = vld [vmem:[%s4018_s20 + $0xf0] sm:$0xff]  ;;  %v1118_v61 = vld [vmem:[%s4063_s19 + $0x98] sm:$0xff] }
  0xe1   : > { %v858_v51 = vmul.f32 %v4077_v18, %v761_v36 }
  0xe2   : > { %v941_v28 = vadd.f32 %v845_v10, %v556_v44  ;;  %v948_v32 = vadd.f32 %v852_v14, %v563_v56  ;;  %v578_v56 = vld [vmem:[%s4011_s8 + $0x140] sm:$0xff]  ;;  %v1554_v14 = vsel %vm1492_vm0, %v3443_v55, 0 }
  0xe3   : > { %3169 = vmatmul.mubr.bf16.vlgmr.msra.gmra.mrb[0].mxu0 %v1132_v12  ;;  %v1025_v12 = vpack.c.bf16 %v938_v2, %v935_v1  ;;  %v954_v1 = vadd.f32 %v858_v51, %v569_v24  ;;  %v770_v3 = vsub.f32 %v674_v57, %v578_v56  ;;  %v3444_v10 = vld [vmem:[%s5458_s5 + $0x80] ss:$12 sps:$4 sm:$0xff]   ;;  %v680_v24 = vld [vmem:[%s4018_s20 + $0x170] sm:$0xff] }
  0xe4   : > { %1598 = vmatmul.mubr.bf16.vlgmr.msra.gmra.mrb[0].mxu1 %v1019_v15  ;;  %3201 = vmatpush3.bf16.xpose.msra.mxu0 %v1542_v21  ;;  %v562_v15 = vld [vmem:[%s4011_s8 + $0xc0] sm:$0xff]  ;;  %v855_v21 = vmul.f32 %v4077_v18, %v758_v6  ;;  %v1028_v42 = vpack.c.bf16 %v944_v29, %v941_v28  ;;  %v1140_v6 = vpack.c.bf16 %v1118_v61, %v1117_v60  ;;  %v1122_v28 = vld [vmem:[%s4063_s19 + $0xb8] sm:$0xff]  ;;  %v639_v57 = vld [vmem:[%s4018_s20 + $0x28] sm:$0xff] }
  0xe5   : > { %3172 = vmatprep.mubr.bf16.mxu0 %v1133_v22  ;;  %1605 = vmatprep.mubr.bf16.mxu1 %v1023_v23  ;;  %v658_v22 = vld [vmem:[%s4018_s20 + $0xc0] sm:$0xff]  ;;  %v661_v23 = vld [vmem:[%s4018_s20 + $0xd8] sm:$0xff] }
  0xe6   : > { %3337 = vmatprep.subr.msk.bf16.mxu0 %vm1492_vm0, %v3440_v16  ;;  %v565_v16 = vld [vmem:[%s4011_s8 + $0xd8] sm:$0xff]  ;;  %v754_v33 = vsub.f32 %v658_v22, %v562_v15  ;;  %v951_v35 = vadd.f32 %v855_v21, %v566_v59  ;;  %v584_v22 = vld [vmem:[%s4011_s8 + $0x170] sm:$0xff]  ;;  %v1123_v29 = vld [vmem:[%s4063_s19 + $0xc0] sm:$0xff] }
  0xe7   : > { %v757_v34 = vsub.f32 %v661_v23, %v565_v16  ;;  %v581_v21 = vld [vmem:[%s4011_s8 + $0x158] sm:$0xff]  ;;  %v776_v36 = vsub.f32 %v680_v24, %v584_v22 }
  0xe8   : > { %v851_v44 = vmul.f32 %v4077_v18, %v754_v33  ;;  %v1032_v50 = vpack.c.bf16 %v951_v35, %v948_v32  ;;  %v677_v23 = vld [vmem:[%s4018_s20 + $0x158] sm:$0xff] }
  0xe9   : > { %v773_v35 = vsub.f32 %v677_v23, %v581_v21  ;;  %v645_v23 = vld [vmem:[%s4018_s20 + $0x58] sm:$0xff] }
  0xea   : > { %v947_v62 = vadd.f32 %v851_v44, %v562_v15  ;;  %v1141_v15 = vpack.c.bf16 %v1120_v5, %v1119_v4  ;;  %v4267_v44 = vld [vmem:[%s4011_s8 + $0x1a0] sm:$0xff]  ;;  %v1128_v5 = vld [vmem:[%s4063_s19 + $0xe8] sm:$0xff]  ;;  %v4318_v24 = vld [vmem:[%s4011_s8 + $0x1b8] sm:$0xff] }
  0xeb   : > { %3173 = vmatmul.mubr.bf16.gmra.mrb[4].mxu0 %v1134_v43  ;;  %v1551_v43 = vsel %vm1492_vm0, %v3442_v13, 0  ;;  %v1127_v4 = vld [vmem:[%s4063_s19 + $0xe0] sm:$0xff] }
  0xec   : > { %1606 = vmatmul.mubr.bf16.gmra.mrb[4].mxu1 %v1022_v45  ;;  %3203 = vmatpush3.bf16.xpose.msra.mxu0 %v1545_v46  ;;  %v854_v45 = vmul.f32 %v4077_v18, %v757_v34  ;;  %v571_v46 = vld [vmem:[%s4011_s8 + $0x108] sm:$0xff] }
  0xed   : > { %3176 = vmatprep.mubr.bf16.mxu0 %v1135_v52  ;;  %1613 = vmatprep.mubr.bf16.mxu1 %v1026_v53  ;;  %v861_v52 = vmul.f32 %v4077_v18, %v764_v37  ;;  %v575_v53 = vld [vmem:[%s4011_s8 + $0x128] sm:$0xff]  ;;  %v763_v59 = vsub.f32 %v667_v48, %v571_v46  ;;  %v4253_v37 = vld [vmem:[%s4011_s8 + $0x150] sm:$0xff] }
  0xee   : > { %3338 = vmatprep.subr.msk.bf16.mxu0 %vm1492_vm0, %v3441_v58  ;;  %v760_v58 = vsub.f32 %v664_v47, %v568_v41  ;;  %v950_v63 = vadd.f32 %v854_v45, %v565_v16  ;;  %v767_v0 = vsub.f32 %v671_v54, %v575_v53  ;;  %v686_v45 = vld [vmem:[%s4018_s20 + $0x1a0] sm:$0xff]  ;;  %v636_v47 = vld [vmem:[%s4018_s20 + $0x10] sm:$0xff]  ;;  %v870_v54 = vmul.f32 %v4077_v18, %v773_v35 }
  0xef   : > { %v957_v2 = vadd.f32 %v861_v52, %v572_v25  ;;  %v860_v8 = vmul.f32 %v4077_v18, %v763_v59  ;;  %v1121_v25 = vld [vmem:[%s4063_s19 + $0xb0] sm:$0xff]  ;;  %v1143_v52 = vpack.c.bf16 %v1124_v30, %v1123_v29  ;;  %v772_v59 = vsub.f32 %v676_v39, %v4253_v37  ;;  %v689_v30 = vld [vmem:[%s4018_s20 + $0x1b8] sm:$0xff]  ;;  %v4334_v39 = vld [vmem:[%s4011_s8 + $0x88] sm:$0xff] }
  0xf0   : > { %v857_v7 = vmul.f32 %v4077_v18, %v760_v58  ;;  %v864_v11 = vmul.f32 %v4077_v18, %v767_v0  ;;  %v1142_v48 = vpack.c.bf16 %v1122_v28, %v1121_v25  ;;  %v3445_v58 = vld [vmem:[%s5458_s5 + $0x98] ss:$12 sps:$4 sm:$0xff]   ;;  %v782_v0 = vsub.f32 %v686_v45, %v4267_v44  ;;  %v4321_v25 = vld [vmem:[%s4011_s8 + $0x1d0] sm:$0xff] }
  0xf1   : > { %v1035_v16 = vpack.c.bf16 %v957_v2, %v954_v1  ;;  %v956_v27 = vadd.f32 %v860_v8, %v571_v46  ;;  %v4271_v46 = vld [vmem:[%s4011_s8 + $0x10] sm:$0xff]  ;;  %v966_v8 = vadd.f32 %v870_v54, %v581_v21  ;;  %v1145_v28 = vpack.c.bf16 %v1128_v5, %v1127_v4  ;;  %v1130_v54 = vld [vmem:[%s4063_s19 + $0xf8] sm:$0xff]  ;;  %v654_v5 = vld [vmem:[%s4018_s20 + $0xa0] sm:$0xff] }
  0xf2   : > { %v953_v26 = vadd.f32 %v857_v7, %v568_v41  ;;  %v960_v31 = vadd.f32 %v864_v11, %v575_v53  ;;  %v4261_v41 = vld [vmem:[%s4011_s8 + $0x188] sm:$0xff]  ;;  %v732_v1 = vsub.f32 %v636_v47, %v4271_v46  ;;  %v4296_v7 = vld [vmem:[%s4011_s8 + $0x180] sm:$0xff]  ;;  %v879_v21 = vmul.f32 %v4077_v18, %v782_v0  ;;  %v3446_v47 = vld [vmem:[%s5458_s5 + $0xb0] ss:$12 sps:$4 sm:$0xff]  }
  0xf3   : > { %3177 = vmatmul.mubr.bf16.gmra.mrb[8].mxu0 %v1136_v9  ;;  %v1031_v9 = vpack.c.bf16 %v950_v63, %v947_v62  ;;  %v1125_v62 = vld [vmem:[%s4063_s19 + $0xd0] sm:$0xff]  ;;  %v1126_v63 = vld [vmem:[%s4063_s19 + $0xd8] sm:$0xff]  ;;  %v682_v11 = vld [vmem:[%s4018_s20 + $0x180] sm:$0xff]  ;;  %v1563_v0 = vsel %vm1492_vm0, %v3446_v47, 0 }
  0xf4   : > { %1614 = vmatmul.mubr.bf16.gmra.mrb[8].mxu1 %v1025_v12  ;;  %3205 = vmatpush3.bf16.xpose.msra.mxu0 %v1548_v17  ;;  %v574_v12 = vld [vmem:[%s4011_s8 + $0x120] sm:$0xff]  ;;  %v867_v17 = vmul.f32 %v4077_v18, %v770_v3  ;;  %v4379_v4 = vld [vmem:[%s4011_s8 + $0xb8] sm:$0xff] }
  0xf5   : > { %3180 = vmatprep.mubr.bf16.mxu0 %v1137_v19  ;;  %1621 = vmatprep.mubr.bf16.mxu1 %v1029_v20  ;;  %v670_v19 = vld [vmem:[%s4018_s20 + $0x120] sm:$0xff]  ;;  %v673_v20 = vld [vmem:[%s4018_s20 + $0x138] sm:$0xff] }
  0xf6   : > { %3339 = vmatprep.subr.msk.bf16.mxu0 %vm1492_vm0, %v3442_v13  ;;  %v577_v13 = vld [vmem:[%s4011_s8 + $0x138] sm:$0xff]  ;;  %v766_v32 = vsub.f32 %v670_v19, %v574_v12  ;;  %v963_v34 = vadd.f32 %v867_v17, %v578_v56  ;;  %v4279_v56 = vld [vmem:[%s4011_s8 + $0x28] sm:$0xff]  ;;  %v642_v19 = vld [vmem:[%s4018_s20 + $0x40] sm:$0xff] }
  0xf7   : > { %v769_v33 = vsub.f32 %v673_v20, %v577_v13  ;;  %v4311_v17 = vld [vmem:[%s4011_s8 + $0x58] sm:$0xff]  ;;  %v1144_v20 = vpack.c.bf16 %v1126_v63, %v1125_v62 }
  0xf8   : > { %v1038_v53 = vpack.c.bf16 %v963_v34, %v960_v31  ;;  %v692_v31 = vld [vmem:[%s4018_s20 + $0x1d0] sm:$0xff]  ;;  %v778_v34 = vsub.f32 %v682_v11, %v4296_v7 }
  0xf9   : > { %v866_v51 = vmul.f32 %v4077_v18, %v769_v33 }
  0xfb   : > { %3181 = vmatmul.mubr.bf16.gmra.mrb[12].mxu0 %v1138_v40  ;;  %v679_v40 = vld [vmem:[%s4018_s20 + $0x168] sm:$0xff]  ;;  %v962_v3 = vadd.f32 %v866_v51, %v577_v13  ;;  %v869_v13 = vmul.f32 %v4077_v18, %v772_v59 }
  0xfc   : > { %1622 = vmatmul.mubr.bf16.gmra.mrb[12].mxu1 %v1028_v42  ;;  %3207 = vmatpush3.bf16.xpose.msra.mxu0 %v1551_v43  ;;  %v683_v42 = vld [vmem:[%s4018_s20 + $0x188] sm:$0xff]  ;;  %v1557_v43 = vsel %vm1492_vm0, %v3444_v10, 0  ;;  %v775_v60 = vsub.f32 %v679_v40, %v4256_v38  ;;  %v648_v40 = vld [vmem:[%s4018_s20 + $0x70] sm:$0xff] }
  0xfd   : > { %3184 = vmatprep.mubr.bf16.mxu0 %v1139_v49  ;;  %1629 = vmatprep.mubr.bf16.mxu1 %v1032_v50  ;;  %v1034_v49 = vpack.c.bf16 %v956_v27, %v953_v26  ;;  %v863_v50 = vmul.f32 %v4077_v18, %v766_v32  ;;  %v779_v61 = vsub.f32 %v683_v42, %v4261_v41  ;;  %v1560_v27 = vsel %vm1492_vm0, %v3445_v58, 0  ;;  %v4328_v32 = vld [vmem:[%s4011_s8 + $0x70] sm:$0xff]  ;;  %v651_v42 = vld [vmem:[%s4018_s20 + $0x88] sm:$0xff] }
  0xfe   : > { %3340 = vmatprep.subr.msk.bf16.mxu0 %vm1492_vm0, %v3443_v55  ;;  %v873_v55 = vmul.f32 %v4077_v18, %v776_v36 }
  0xff   : > { %v959_v2 = vadd.f32 %v863_v50, %v574_v12  ;;  %v685_v12 = vld [vmem:[%s4018_s20 + $0x198] sm:$0xff]  ;;  %v975_v50 = vadd.f32 %v879_v21, %v4267_v44  ;;  %v744_v44 = vsub.f32 %v648_v40, %v4328_v32 }
 0x101   : > { %v1037_v26 = vpack.c.bf16 %v962_v3, %v959_v2  ;;  %v4376_v3 = vld [vmem:[%s4011_s8 + $0xa0] sm:$0xff] }
 0x103   : > { %3185 = vmatmul.mubr.bf16.gmra.mrb[16].mxu0 %v1140_v6  ;;  %v735_v6 = vsub.f32 %v639_v57, %v4279_v56  ;;  %v875_v57 = vmul.f32 %v4077_v18, %v778_v34 }
 0x104   : > { %1630 = vmatmul.mubr.bf16.gmra.mrb[16].mxu1 %v1031_v9  ;;  %3209 = vmatpush3.bf16.xpose.msra.mxu0 %v1554_v14  ;;  %v969_v9 = vadd.f32 %v873_v55, %v584_v22  ;;  %v872_v14 = vmul.f32 %v4077_v18, %v775_v60  ;;  %v829_v22 = vmul.f32 %v4077_v18, %v732_v1  ;;  %v4368_v60 = vld [vmem:[%s4011_s8 + $0x1c8] sm:$0xff] }
 0x105   : > { %3188 = vmatprep.mubr.bf16.mxu0 %v1141_v15  ;;  %1637 = vmatprep.mubr.bf16.mxu1 %v1035_v16  ;;  %v876_v15 = vmul.f32 %v4077_v18, %v779_v61  ;;  %v4308_v16 = vld [vmem:[%s4011_s8 + $0x40] sm:$0xff]  ;;  %v832_v29 = vmul.f32 %v4077_v18, %v735_v6  ;;  %v691_v61 = vld [vmem:[%s4018_s20 + $0x1c8] sm:$0xff] }
 0x106   : > { %3341 = vmatprep.subr.msk.bf16.mxu0 %vm1492_vm0, %v3444_v10  ;;  %v4299_v10 = vld [vmem:[%s4011_s8 + $0x198] sm:$0xff]  ;;  %v1041_v33 = vpack.c.bf16 %v969_v9, %v966_v8  ;;  %v738_v36 = vsub.f32 %v642_v19, %v4308_v16  ;;  %v968_v45 = vadd.f32 %v872_v14, %v4256_v38  ;;  %v4349_v51 = vadd.f32 %v829_v22, %v4271_v46  ;;  %v4354_v38 = vld [vmem:[%s4011_s8 + $0x1b0] sm:$0xff]  ;;  %v4399_v22 = vld [vmem:[%s4011_s8 + $0x1e8] sm:$0xff] }
 0x107   : > { %v781_v35 = vsub.f32 %v685_v12, %v4299_v10  ;;  %v928_v55 = vadd.f32 %v832_v29, %v4279_v56  ;;  %v747_v46 = vsub.f32 %v651_v42, %v4334_v39  ;;  %v841_v9 = vmul.f32 %v4077_v18, %v744_v44  ;;  %v657_v12 = vld [vmem:[%s4018_s20 + $0xb8] sm:$0xff]  ;;  %v660_v14 = vld [vmem:[%s4018_s20 + $0xd0] sm:$0xff]  ;;  %v4422_v42 = vld [vmem:[%s4011_s8 + $0x1e0] sm:$0xff] }
 0x108   : > { %v835_v59 = vmul.f32 %v4077_v18, %v738_v36  ;;  %v4392_v19 = vadd.f32 %v875_v57, %v4296_v7  ;;  %v750_v7 = vsub.f32 %v654_v5, %v4376_v3  ;;  %v672_v5 = vld [vmem:[%s4018_s20 + $0x130] sm:$0xff] }
 0x109   : > { %v844_v11 = vmul.f32 %v4077_v18, %v747_v46 }
 0x10a   : > { %v931_v21 = vadd.f32 %v835_v59, %v4308_v16  ;;  %v4455_v59 = vld [vmem:[%s4011_s8 + $0x230] sm:$0xff] }
 0x10b   : > { %3189 = vmatmul.mubr.bf16.gmra.mrb[20].mxu0 %v1142_v48  ;;  %v4344_v48 = vadd.f32 %v876_v15, %v4261_v41  ;;  %v1129_v41 = vld [vmem:[%s4063_s19 + $0xf0] sm:$0xff]  ;;  %v1021_v15 = vpack.c.bf16 %v928_v55, %v4349_v51  ;;  %v940_v36 = vadd.f32 %v844_v11, %v4334_v39  ;;  %v701_v55 = vld [vmem:[%s4018_s20 + $0x218] sm:$0xff] }
 0x10c   : > { %1638 = vmatmul.mubr.bf16.gmra.mrb[20].mxu1 %v1034_v49  ;;  %3211 = vmatpush3.bf16.xpose.msra.mxu0 %v1557_v43  ;;  %v965_v43 = vadd.f32 %v869_v13, %v4253_v37  ;;  %v741_v49 = vsub.f32 %v645_v23, %v4311_v17  ;;  %v788_v37 = vsub.f32 %v692_v31, %v4321_v25  ;;  %v4387_v13 = vld [vmem:[%s4011_s8 + $0xd0] sm:$0xff]  ;;  %v4402_v23 = vld [vmem:[%s4011_s8 + $0xe8] sm:$0xff]  ;;  %v698_v31 = vld [vmem:[%s4018_s20 + $0x200] sm:$0xff] }
 0x10d   : > { %3192 = vmatprep.mubr.bf16.mxu0 %v1143_v52  ;;  %1645 = vmatprep.mubr.bf16.mxu1 %v1038_v53  ;;  %v785_v52 = vsub.f32 %v689_v30, %v4318_v24  ;;  %v688_v53 = vld [vmem:[%s4018_s20 + $0x1b0] sm:$0xff]  ;;  %v1146_v63 = vpack.c.bf16 %v1130_v54, %v1129_v41  ;;  %v1044_v8 = vpack.c.bf16 %v975_v50, %v4344_v48  ;;  %v4410_v30 = vld [vmem:[%s4011_s8 + $0x200] sm:$0xff]  ;;  %v669_v41 = vld [vmem:[%s4018_s20 + $0x118] sm:$0xff] }
 0x10e   : > { %3342 = vmatprep.subr.msk.bf16.mxu0 %vm1492_vm0, %v3445_v58  ;;  %v878_v58 = vmul.f32 %v4077_v18, %v781_v35  ;;  %v838_v56 = vmul.f32 %v4077_v18, %v741_v49  ;;  %v784_v62 = vsub.f32 %v688_v53, %v4354_v38  ;;  %v885_v2 = vmul.f32 %v4077_v18, %v788_v37  ;;  %v4436_v48 = vld [vmem:[%s4011_s8 + $0x100] sm:$0xff]  ;;  %v4439_v49 = vld [vmem:[%s4011_s8 + $0x118] sm:$0xff] }
 0x10f   : > { %v882_v1 = vmul.f32 %v4077_v18, %v785_v52  ;;  %v1040_v6 = vpack.c.bf16 %v968_v45, %v965_v43  ;;  %v756_v34 = vsub.f32 %v660_v14, %v4387_v13  ;;  %v937_v35 = vadd.f32 %v841_v9, %v4328_v32  ;;  %v4428_v43 = vld [vmem:[%s4011_s8 + $0x1f8] sm:$0xff]  ;;  %v694_v45 = vld [vmem:[%s4018_s20 + $0x1e0] sm:$0xff] }
 0x110   : > { %v881_v29 = vmul.f32 %v4077_v18, %v784_v62  ;;  %v697_v32 = vld [vmem:[%s4018_s20 + $0x1f8] sm:$0xff]  ;;  %v666_v50 = vld [vmem:[%s4018_s20 + $0x100] sm:$0xff]  ;;  %v847_v52 = vmul.f32 %v4077_v18, %v750_v7  ;;  %v765_v9 = vsub.f32 %v669_v41, %v4439_v49  ;;  %v4494_v7 = vld [vmem:[%s4011_s8 + $0x228] sm:$0xff] }
 0x111   : > { %v978_v16 = vadd.f32 %v882_v1, %v4318_v24  ;;  %v853_v53 = vmul.f32 %v4077_v18, %v756_v34  ;;  %v4447_v54 = vld [vmem:[%s4011_s8 + $0x218] sm:$0xff]  ;;  %v1027_v46 = vpack.c.bf16 %v940_v36, %v937_v35  ;;  %v793_v1 = vsub.f32 %v697_v32, %v4428_v43 }
 0x112   : > { %v4451_v57 = vadd.f32 %v881_v29, %v4354_v38  ;;  %v675_v38 = vld [vmem:[%s4018_s20 + $0x148] sm:$0xff]  ;;  %v797_v11 = vsub.f32 %v701_v55, %v4447_v54 }
 0x113   : > { %3193 = vmatmul.mubr.bf16.gmra.mrb[24].mxu0 %v1144_v20  ;;  %v4395_v20 = vadd.f32 %v878_v58, %v4299_v10  ;;  %v695_v10 = vld [vmem:[%s4018_s20 + $0x1e8] sm:$0xff] }
 0x114   : > { %1646 = vmatmul.mubr.bf16.gmra.mrb[24].mxu1 %v1037_v26  ;;  %3213 = vmatpush3.bf16.xpose.msra.mxu0 %v1560_v27  ;;  %v663_v26 = vld [vmem:[%s4018_s20 + $0xe8] sm:$0xff]  ;;  %v934_v27 = vadd.f32 %v838_v56, %v4311_v17  ;;  %v753_v17 = vsub.f32 %v657_v12, %v4379_v4  ;;  %v791_v24 = vsub.f32 %v695_v10, %v4399_v22  ;;  %v704_v56 = vld [vmem:[%s4018_s20 + $0x230] sm:$0xff] }
 0x115   : > { %3196 = vmatprep.mubr.bf16.mxu0 %v1145_v28  ;;  %1653 = vmatprep.mubr.bf16.mxu1 %v1041_v33  ;;  %v787_v28 = vsub.f32 %v691_v61, %v4368_v60  ;;  %v981_v33 = vadd.f32 %v885_v2, %v4321_v25  ;;  %v759_v40 = vsub.f32 %v663_v26, %v4402_v23  ;;  %v4459_v61 = vld [vmem:[%s4011_s8 + $0x130] sm:$0xff]  ;;  %v4466_v2 = vld [vmem:[%s4011_s8 + $0x148] sm:$0xff] }
 0x116   : > { %3343 = vmatprep.subr.msk.bf16.mxu0 %vm1492_vm0, %v3446_v47  ;;  %v794_v25 = vsub.f32 %v698_v31, %v4410_v30  ;;  %v1043_v39 = vpack.c.bf16 %v4395_v20, %v4392_v19  ;;  %v1024_v51 = vpack.c.bf16 %v934_v27, %v931_v21  ;;  %v850_v37 = vmul.f32 %v4077_v18, %v753_v17  ;;  %v4488_v27 = vld [vmem:[%s4011_s8 + $0x210] sm:$0xff]  ;;  %v703_v10 = vld [vmem:[%s4018_s20 + $0x228] sm:$0xff]  ;;  %v678_v17 = vld [vmem:[%s4018_s20 + $0x160] sm:$0xff] }
 0x117   : > { %v884_v47 = vmul.f32 %v4077_v18, %v787_v28  ;;  %v1047_v44 = vpack.c.bf16 %v981_v33, %v978_v16  ;;  %v856_v58 = vmul.f32 %v4077_v18, %v759_v40  ;;  %v888_v62 = vmul.f32 %v4077_v18, %v791_v24  ;;  %v4500_v16 = vld [vmem:[%s4011_s8 + $0x160] sm:$0xff]  ;;  %v4503_v33 = vld [vmem:[%s4011_s8 + $0x178] sm:$0xff] }
 0x118   : > { %v943_v12 = vadd.f32 %v847_v52, %v4376_v3  ;;  %v946_v14 = vadd.f32 %v850_v37, %v4379_v4  ;;  %v800_v19 = vsub.f32 %v704_v56, %v4455_v59  ;;  %v768_v20 = vsub.f32 %v672_v5, %v4459_v61  ;;  %v681_v24 = vld [vmem:[%s4018_s20 + $0x178] sm:$0xff]  ;;  %v4525_v52 = vld [vmem:[%s4011_s8 + $0x1a8] sm:$0xff] }
 0x119   : > { %v771_v21 = vsub.f32 %v675_v38, %v4466_v2  ;;  %v984_v3 = vadd.f32 %v888_v62, %v4399_v22  ;;  %v890_v26 = vmul.f32 %v4077_v18, %v793_v1  ;;  %v862_v28 = vmul.f32 %v4077_v18, %v765_v9  ;;  %v700_v22 = vld [vmem:[%s4018_s20 + $0x210] sm:$0xff]  ;;  %v687_v37 = vld [vmem:[%s4018_s20 + $0x1a8] sm:$0xff]  ;;  %v4547_v1 = vld [vmem:[%s4011_s8 + $0x240] sm:$0xff] }
 0x11a   : > { %v894_v29 = vmul.f32 %v4077_v18, %v797_v11  ;;  %v897_v31 = vmul.f32 %v4077_v18, %v800_v19  ;;  %v865_v36 = vmul.f32 %v4077_v18, %v768_v20  ;;  %v783_v62 = vsub.f32 %v687_v37, %v4525_v52  ;;  %v4550_v5 = vld [vmem:[%s4011_s8 + $0x258] sm:$0xff] }
 0x11b   : > { %3197 = vmatmul.mubr.bf16.gmra.mrb[28].mxu0 %v1146_v63  ;;  %v891_v63 = vmul.f32 %v4077_v18, %v794_v25  ;;  %v868_v40 = vmul.f32 %v4077_v18, %v771_v21  ;;  %v4511_v25 = vld [vmem:[%s4011_s8 + $0x190] sm:$0xff]  ;;  %v958_v41 = vadd.f32 %v862_v28, %v4439_v49  ;;  %v709_v38 = vld [vmem:[%s4018_s20 + $0x258] sm:$0xff] }
 0x11c   : > { %1654 = vmatmul.mubr.bf16.gmra.mrb[28].mxu1 %v1040_v6  ;;  %3215 = vmatpush3.bf16.xpose.msra.mxu0 %v1563_v0  ;;  %v790_v0 = vsub.f32 %v694_v45, %v4422_v42  ;;  %v980_v6 = vadd.f32 %v884_v47, %v4368_v60  ;;  %v952_v60 = vadd.f32 %v856_v58, %v4402_v23  ;;  %v684_v45 = vld [vmem:[%s4018_s20 + $0x190] sm:$0xff]  ;;  %v693_v19 = vld [vmem:[%s4018_s20 + $0x1d8] sm:$0xff] }
 0x11d   : > { %1661 = vmatprep.mubr.bf16.mxu1 %v1044_v8  ;;  %3216 = vmatprep.mubr.msk.bf16.mxu0 %vm1492_vm0, %v1021_v15  ;;  %v762_v8 = vsub.f32 %v666_v50, %v4436_v48  ;;  %v949_v15 = vadd.f32 %v853_v53, %v4387_v13  ;;  %v987_v4 = vadd.f32 %v891_v63, %v4410_v30 }
 0x11e   : > { %v887_v13 = vmul.f32 %v4077_v18, %v790_v0  ;;  %v1030_v30 = vpack.c.bf16 %v946_v14, %v943_v12  ;;  %v1046_v34 = vpack.c.bf16 %v980_v6, %v4451_v57  ;;  %v4518_v47 = vadd.f32 %v890_v26, %v4428_v43  ;;  %v710_v43 = vld [vmem:[%s4018_s20 + $0x260] sm:$0xff]  ;;  %v4562_v14 = vld [vmem:[%s4011_s8 + $0x1d8] sm:$0xff]  ;;  %v4574_v26 = vld [vmem:[%s4011_s8 + $0x1f0] sm:$0xff] }
 0x11f   : > { %v859_v23 = vmul.f32 %v4077_v18, %v762_v8  ;;  %v1033_v35 = vpack.c.bf16 %v952_v60, %v949_v15  ;;  %v1050_v32 = vpack.c.bf16 %v987_v4, %v984_v3  ;;  %v796_v50 = vsub.f32 %v700_v22, %v4488_v27  ;;  %v4556_v6 = vld [vmem:[%s4011_s8 + $0x1c0] sm:$0xff]  ;;  %v4570_v4 = vld [vmem:[%s4011_s8 + $0x278] sm:$0xff] }
 0x120   : > { %v990_v55 = vadd.f32 %v894_v29, %v4447_v54  ;;  %v993_v57 = vadd.f32 %v897_v31, %v4455_v59  ;;  %v774_v58 = vsub.f32 %v678_v17, %v4500_v16  ;;  %v780_v49 = vsub.f32 %v684_v45, %v4511_v25  ;;  %v690_v15 = vld [vmem:[%s4018_s20 + $0x1c0] sm:$0xff]  ;;  %v699_v31 = vld [vmem:[%s4018_s20 + $0x208] sm:$0xff] }
 0x121   : > { %v955_v53 = vadd.f32 %v859_v23, %v4436_v48  ;;  %v777_v48 = vsub.f32 %v681_v24, %v4503_v33  ;;  %v961_v54 = vadd.f32 %v865_v36, %v4459_v61  ;;  %v964_v56 = vadd.f32 %v868_v40, %v4466_v2  ;;  %v706_v2 = vld [vmem:[%s4018_s20 + $0x240] sm:$0xff]  ;;  %v716_v40 = vld [vmem:[%s4018_s20 + $0x290] sm:$0xff] }
 0x122   : > { %v893_v59 = vmul.f32 %v4077_v18, %v796_v50  ;;  %v871_v9 = vmul.f32 %v4077_v18, %v774_v58  ;;  %v877_v12 = vmul.f32 %v4077_v18, %v780_v49  ;;  %v1053_v20 = vpack.c.bf16 %v993_v57, %v990_v55  ;;  %v4617_v57 = vld [vmem:[%s4011_s8 + $0x220] sm:$0xff]  ;;  %v4620_v58 = vld [vmem:[%s4011_s8 + $0x238] sm:$0xff] }
 0x123   : > { %3217 = vmatmul.mubr.msk.bf16.vlgmr.msra.gmra.mrb[32].mxu0 %vm1492_vm0, %v1024_v51  ;;  %v4522_v51 = vld [vmem:[%s4011_s8 + $0x248] sm:$0xff]  ;;  %v1036_v8 = vpack.c.bf16 %v958_v41, %v955_v53  ;;  %v874_v11 = vmul.f32 %v4077_v18, %v777_v48  ;;  %v1039_v21 = vpack.c.bf16 %v964_v56, %v961_v54  ;;  %v880_v3 = vmul.f32 %v4077_v18, %v783_v62  ;;  %v4605_v53 = vld [vmem:[%s4011_s8 + $0x270] sm:$0xff]  ;;  %v702_v48 = vld [vmem:[%s4018_s20 + $0x220] sm:$0xff] }
 0x124   : > { %1662 = vmatmul.mubr.bf16.gmra.mrb[32].mxu1 %v1043_v39  ;;  %3220 = vmatprep.mubr.msk.bf16.mxu0 %vm1492_vm0, %v1027_v46  ;;  %v4515_v39 = vadd.f32 %v887_v13, %v4422_v42  ;;  %v614_v42 = vld [vmem:[%s4011_s8 + $0x260] sm:$0xff]  ;;  %v707_v46 = vld [vmem:[%s4018_s20 + $0x248] sm:$0xff]  ;;  %v713_v13 = vld [vmem:[%s4018_s20 + $0x278] sm:$0xff]  ;;  %v4577_v23 = vadd.f32 %v893_v59, %v4488_v27  ;;  %v802_v22 = vsub.f32 %v706_v2, %v4547_v1 }
 0x125   : > { %1669 = vmatprep.mubr.bf16.mxu1 %v1047_v44  ;;  %v799_v44 = vsub.f32 %v703_v10, %v4494_v7  ;;  %v803_v63 = vsub.f32 %v707_v46, %v4522_v51  ;;  %v806_v0 = vsub.f32 %v710_v43, %v614_v42  ;;  %v4583_v10 = vld [vmem:[%s4011_s8 + $0x208] sm:$0xff]  ;;  %v789_v36 = vsub.f32 %v693_v19, %v4562_v14  ;;  %v620_v27 = vld [vmem:[%s4011_s8 + $0x290] sm:$0xff]  ;;  %v705_v59 = vld [vmem:[%s4018_s20 + $0x238] sm:$0xff] }
 0x126   : > { %v1049_v60 = vpack.c.bf16 %v4518_v47, %v4515_v39  ;;  %v967_v24 = vadd.f32 %v871_v9, %v4500_v16  ;;  %v970_v45 = vadd.f32 %v874_v11, %v4503_v33  ;;  %v976_v39 = vadd.f32 %v880_v3, %v4525_v52  ;;  %v712_v46 = vld [vmem:[%s4018_s20 + $0x270] sm:$0xff]  ;;  %v715_v43 = vld [vmem:[%s4018_s20 + $0x288] sm:$0xff]  ;;  %v722_v3 = vld [vmem:[%s4018_s20 + $0x2c0] sm:$0xff] }
 0x127   : > { %v896_v61 = vmul.f32 %v4077_v18, %v799_v44  ;;  %v900_v28 = vmul.f32 %v4077_v18, %v803_v63  ;;  %v903_v29 = vmul.f32 %v4077_v18, %v806_v0  ;;  %v795_v50 = vsub.f32 %v699_v31, %v4583_v10  ;;  %v4611_v44 = vld [vmem:[%s4011_s8 + $0x288] sm:$0xff]  ;;  %v4628_v63 = vld [vmem:[%s4011_s8 + $0x250] sm:$0xff] }
 0x128   : > { %v812_v37 = vsub.f32 %v716_v40, %v620_v27  ;;  %v886_v55 = vmul.f32 %v4077_v18, %v789_v36  ;;  %v708_v0 = vld [vmem:[%s4018_s20 + $0x250] sm:$0xff]  ;;  %v4637_v9 = vld [vmem:[%s4011_s8 + $0x2a8] sm:$0xff] }
 0x129   : > { %v992_v17 = vadd.f32 %v896_v61, %v4494_v7  ;;  %v809_v7 = vsub.f32 %v713_v13, %v4570_v4  ;;  %v996_v16 = vadd.f32 %v900_v28, %v4522_v51  ;;  %v999_v33 = vadd.f32 %v903_v29, %v614_v42  ;;  %v4640_v11 = vld [vmem:[%s4011_s8 + $0x268] sm:$0xff] }
 0x12a   : > { %v1042_v51 = vpack.c.bf16 %v970_v45, %v967_v24  ;;  %v892_v62 = vmul.f32 %v4077_v18, %v795_v50  ;;  %v618_v45 = vld [vmem:[%s4011_s8 + $0x280] sm:$0xff] }
 0x12b   : > { %3221 = vmatmul.mubr.msk.bf16.gmra.mrb[36].mxu0 %vm1492_vm0, %v1030_v30  ;;  %v696_v30 = vld [vmem:[%s4018_s20 + $0x1f0] sm:$0xff]  ;;  %v906_v42 = vmul.f32 %v4077_v18, %v809_v7  ;;  %v1052_v49 = vpack.c.bf16 %v992_v17, %v4577_v23  ;;  %v1056_v61 = vpack.c.bf16 %v999_v33, %v996_v16  ;;  %v798_v23 = vsub.f32 %v702_v48, %v4617_v57  ;;  %v4662_v17 = vld [vmem:[%s4011_s8 + $0x2a0] sm:$0xff]  ;;  %v717_v16 = vld [vmem:[%s4018_s20 + $0x298] sm:$0xff] }
 0x12c   : > { %1670 = vmatmul.mubr.bf16.gmra.mrb[36].mxu1 %v1046_v34  ;;  %3224 = vmatprep.mubr.msk.bf16.mxu0 %vm1492_vm0, %v1033_v35  ;;  %v805_v34 = vsub.f32 %v709_v38, %v4550_v5  ;;  %v786_v35 = vsub.f32 %v690_v15, %v4556_v6  ;;  %v792_v47 = vsub.f32 %v696_v30, %v4574_v26  ;;  %v714_v7 = vld [vmem:[%s4018_s20 + $0x280] sm:$0xff]  ;;  %v4680_v33 = vld [vmem:[%s4011_s8 + $0x2d8] sm:$0xff] }
 0x12d   : > { %1677 = vmatprep.mubr.bf16.mxu1 %v1050_v32  ;;  %v973_v32 = vadd.f32 %v877_v12, %v4511_v25  ;;  %v899_v25 = vmul.f32 %v4077_v18, %v802_v22  ;;  %v909_v38 = vmul.f32 %v4077_v18, %v812_v37  ;;  %v711_v12 = vld [vmem:[%s4018_s20 + $0x268] sm:$0xff]  ;;  %v1002_v13 = vadd.f32 %v906_v42, %v4570_v4 }
 0x12e   : > { %v902_v41 = vmul.f32 %v4077_v18, %v805_v34  ;;  %v883_v52 = vmul.f32 %v4077_v18, %v786_v35  ;;  %v889_v56 = vmul.f32 %v4077_v18, %v792_v47  ;;  %v988_v28 = vadd.f32 %v892_v62, %v4583_v10  ;;  %v4666_v10 = vld [vmem:[%s4011_s8 + $0x2b8] sm:$0xff]  ;;  %v718_v34 = vld [vmem:[%s4018_s20 + $0x2a0] sm:$0xff] }
 0x12f   : > { %v1045_v54 = vpack.c.bf16 %v976_v39, %v973_v32  ;;  %v4632_v2 = vadd.f32 %v899_v25, %v4547_v1  ;;  %v719_v1 = vld [vmem:[%s4018_s20 + $0x2a8] sm:$0xff]  ;;  %v807_v29 = vsub.f32 %v711_v12, %v4640_v11  ;;  %v1005_v4 = vadd.f32 %v909_v38, %v620_v27  ;;  %v721_v35 = vld [vmem:[%s4018_s20 + $0x2b8] sm:$0xff]  ;;  %v624_v25 = vld [vmem:[%s4011_s8 + $0x2b0] sm:$0xff] }
 0x130   : > { %v998_v15 = vadd.f32 %v902_v41, %v4550_v5  ;;  %v979_v19 = vadd.f32 %v883_v52, %v4556_v6  ;;  %v801_v5 = vsub.f32 %v705_v59, %v4620_v58  ;;  %v804_v6 = vsub.f32 %v708_v0, %v4628_v63  ;;  %v621_v32 = vld [vmem:[%s4011_s8 + $0x298] sm:$0xff]  ;;  %v728_v59 = vld [vmem:[%s4018_s20 + $0x2f0] sm:$0xff] }
 0x131   : > { %v815_v30 = vsub.f32 %v719_v1, %v4637_v9  ;;  %v895_v40 = vmul.f32 %v4077_v18, %v798_v23  ;;  %v904_v50 = vmul.f32 %v4077_v18, %v807_v29  ;;  %v1059_v37 = vpack.c.bf16 %v1005_v4, %v1002_v13  ;;  %v725_v62 = vld [vmem:[%s4018_s20 + $0x2d8] sm:$0xff]  ;;  %v628_v1 = vld [vmem:[%s4011_s8 + $0x2d0] sm:$0xff] }
 0x132   : > { %v898_v27 = vmul.f32 %v4077_v18, %v801_v5  ;;  %v901_v24 = vmul.f32 %v4077_v18, %v804_v6  ;;  %v1055_v39 = vpack.c.bf16 %v998_v15, %v4632_v2  ;;  %v814_v48 = vsub.f32 %v718_v34, %v4662_v17  ;;  %v633_v6 = vld [vmem:[%s4011_s8 + $0x2f8] sm:$0xff] }
 0x133   : > { %3225 = vmatmul.mubr.msk.bf16.gmra.mrb[40].mxu0 %vm1492_vm0, %v1036_v8  ;;  %v808_v8 = vsub.f32 %v712_v46, %v4605_v53  ;;  %v912_v52 = vmul.f32 %v4077_v18, %v815_v30  ;;  %v627_v46 = vld [vmem:[%s4011_s8 + $0x2c8] sm:$0xff]  ;;  %v813_v2 = vsub.f32 %v717_v16, %v621_v32 }
 0x134   : > { %1678 = vmatmul.mubr.bf16.gmra.mrb[40].mxu1 %v1049_v60  ;;  %3228 = vmatprep.mubr.msk.bf16.mxu0 %vm1492_vm0, %v1039_v21  ;;  %v982_v60 = vadd.f32 %v886_v55, %v4562_v14  ;;  %v626_v21 = vld [vmem:[%s4011_s8 + $0x2c0] sm:$0xff]  ;;  %v985_v14 = vadd.f32 %v889_v56, %v4574_v26  ;;  %v632_v56 = vld [vmem:[%s4011_s8 + $0x2f0] sm:$0xff]  ;;  %v994_v0 = vadd.f32 %v898_v27, %v4620_v58  ;;  %v631_v30 = vld [vmem:[%s4011_s8 + $0x2e8] sm:$0xff] }
 0x135   : > { %1685 = vmatprep.mubr.bf16.mxu1 %v1053_v20  ;;  %v811_v20 = vsub.f32 %v715_v43, %v4611_v44  ;;  %v905_v22 = vmul.f32 %v4077_v18, %v808_v8  ;;  %v818_v31 = vsub.f32 %v722_v3, %v626_v21  ;;  %v720_v43 = vld [vmem:[%s4018_s20 + $0x2b0] sm:$0xff]  ;;  %v1008_v12 = vadd.f32 %v912_v52, %v4637_v9  ;;  %v630_v3 = vld [vmem:[%s4011_s8 + $0x2e0] sm:$0xff] }
 0x136   : > { %v1048_v36 = vpack.c.bf16 %v982_v60, %v979_v19  ;;  %v1051_v47 = vpack.c.bf16 %v988_v28, %v985_v14  ;;  %v816_v38 = vsub.f32 %v720_v43, %v624_v25  ;;  %v821_v58 = vsub.f32 %v725_v62, %v4680_v33  ;;  %v724_v9 = vld [vmem:[%s4018_s20 + $0x2d0] sm:$0xff]  ;;  %v726_v14 = vld [vmem:[%s4018_s20 + $0x2e0] sm:$0xff]  ;;  %v729_v28 = vld [vmem:[%s4018_s20 + $0x2f8] sm:$0xff] }
 0x137   : > { %v908_v26 = vmul.f32 %v4077_v18, %v811_v20  ;;  %v1001_v41 = vadd.f32 %v905_v22, %v4605_v53  ;;  %v915_v55 = vmul.f32 %v4077_v18, %v818_v31  ;;  %v991_v53 = vadd.f32 %v895_v40, %v4617_v57  ;;  %v727_v31 = vld [vmem:[%s4018_s20 + $0x2e8] sm:$0xff] }
 0x138   : > { %v911_v15 = vmul.f32 %v4077_v18, %v814_v48  ;;  %v910_v20 = vmul.f32 %v4077_v18, %v813_v2  ;;  %v913_v23 = vmul.f32 %v4077_v18, %v816_v38  ;;  %v918_v4 = vmul.f32 %v4077_v18, %v821_v58  ;;  %v3447_v48 = vld [vmem:[#allocation9] sm:$0xff]  }
 0x139   : > { %v1004_v42 = vadd.f32 %v908_v26, %v4611_v44  ;;  %v1000_v44 = vadd.f32 %v904_v50, %v4640_v11  ;;  %v1011_v57 = vadd.f32 %v915_v55, %v626_v21  ;;  %v1054_v11 = vpack.c.bf16 %v994_v0, %v991_v53  ;;  %3248 = vmatprep.subr.bf16.mxu0 %v3447_v48 }
 0x13a   : > { %v1007_v26 = vadd.f32 %v911_v15, %v4662_v17  ;;  %v820_v40 = vsub.f32 %v724_v9, %v628_v1  ;;  %v822_v27 = vsub.f32 %v726_v14, %v630_v3  ;;  %v1014_v50 = vadd.f32 %v918_v4, %v4680_v33  ;;  %3249 = vmatpush3.bf16.xpose.msra.mxu0 %v3447_v48 }
 0x13b   : > { %3229 = vmatmul.mubr.msk.bf16.gmra.mrb[44].mxu0 %vm1492_vm0, %v1042_v51  ;;  %v723_v51 = vld [vmem:[%s4018_s20 + $0x2c8] sm:$0xff]  ;;  %v1058_v21 = vpack.c.bf16 %v1004_v42, %v1001_v41  ;;  %v1062_v29 = vpack.c.bf16 %v1011_v57, %v1008_v12 }
 0x13c   : > { %1686 = vmatmul.mubr.bf16.gmra.mrb[44].mxu1 %v1052_v49  ;;  %3232 = vmatprep.mubr.msk.bf16.mxu0 %vm1492_vm0, %v1045_v54  ;;  %v817_v49 = vsub.f32 %v721_v35, %v4666_v10  ;;  %v810_v54 = vsub.f32 %v714_v7, %v618_v45  ;;  %v819_v8 = vsub.f32 %v723_v51, %v627_v46 }
 0x13d   : > { %1693 = vmatprep.mubr.bf16.mxu1 %v1056_v61  ;;  %v997_v61 = vadd.f32 %v901_v24, %v4628_v63  ;;  %v824_v63 = vsub.f32 %v728_v59, %v632_v56  ;;  %v825_v24 = vsub.f32 %v729_v28, %v633_v6  ;;  %v1009_v7 = vadd.f32 %v913_v23, %v624_v25 }
 0x13e   : > { %v914_v19 = vmul.f32 %v4077_v18, %v817_v49  ;;  %v907_v60 = vmul.f32 %v4077_v18, %v810_v54  ;;  %v916_v5 = vmul.f32 %v4077_v18, %v819_v8  ;;  %v917_v41 = vmul.f32 %v4077_v18, %v820_v40  ;;  %v3449_v49 = vld [vmem:[#allocation9 + $0x10] sm:$0xff]   ;;  %v3450_v54 = vld [vmem:[#allocation9 + $0x18] sm:$0xff]  }
 0x13f   : > { %v1057_v13 = vpack.c.bf16 %v1000_v44, %v997_v61  ;;  %v921_v22 = vmul.f32 %v4077_v18, %v824_v63 }
 0x140   : > { %v1010_v34 = vadd.f32 %v914_v19, %v4666_v10  ;;  %v1003_v35 = vadd.f32 %v907_v60, %v618_v45  ;;  %v919_v10 = vmul.f32 %v4077_v18, %v822_v27  ;;  %v922_v45 = vmul.f32 %v4077_v18, %v825_v24 }
 0x141   : > { %v1017_v16 = vadd.f32 %v921_v22, %v632_v56  ;;  %v1013_v33 = vadd.f32 %v917_v41, %v628_v1 }
 0x142   : > { %v1015_v25 = vadd.f32 %v919_v10, %v630_v3 }
 0x143   : > { %3233 = vmatmul.mubr.msk.bf16.gmra.mrb[48].mxu0 %vm1492_vm0, %v1048_v36  ;;  %v1006_v36 = vadd.f32 %v910_v20, %v621_v32  ;;  %v1065_v55 = vpack.c.bf16 %v1017_v16, %v1014_v50 }
 0x144   : > { %1694 = vmatmul.mubr.bf16.gmra.mrb[48].mxu1 %v1055_v39  ;;  %3236 = vmatprep.mubr.msk.bf16.mxu0 %vm1492_vm0, %v1051_v47  ;;  %v1012_v39 = vadd.f32 %v916_v5, %v627_v46  ;;  %v823_v47 = vsub.f32 %v727_v31, %v631_v30  ;;  %v1018_v46 = vadd.f32 %v922_v45, %v633_v6 }
 0x145   : > { %1701 = vmatprep.mubr.bf16.mxu1 %v1059_v37  ;;  %v1060_v17 = vpack.c.bf16 %v1006_v36, %v1003_v35  ;;  %v1061_v37 = vpack.c.bf16 %v1010_v34, %v1007_v26 }
 0x146   : > { %v1063_v32 = vpack.c.bf16 %v1012_v39, %v1009_v7  ;;  %v920_v52 = vmul.f32 %v4077_v18, %v823_v47  ;;  %v1066_v51 = vpack.c.bf16 %v1018_v46, %v1015_v25  ;;  %v3448_v18 = vld [vmem:[#allocation9 + $0x8] sm:$0xff]  }
 0x147   : > { %3250 = vmatprep.subr.bf16.mxu0 %v3448_v18 }
 0x148   : > { %v1016_v43 = vadd.f32 %v920_v52, %v631_v30  ;;  %3251 = vmatpush3.bf16.xpose.msra.mxu0 %v3448_v18 }
 0x149   : > { %3252 = vmatprep.subr.bf16.mxu0 %v3449_v49 }
 0x14a   : > { %v1064_v42 = vpack.c.bf16 %v1016_v43, %v1013_v33 }
 0x14b   : > { %3237 = vmatmul.mubr.msk.bf16.gmra.mrb[52].mxu0 %vm1492_vm0, %v1054_v11 }
 0x14c   : > { %1702 = vmatmul.mubr.bf16.gmra.mrb[52].mxu1 %v1058_v21  ;;  %3240 = vmatprep.mubr.msk.bf16.mxu0 %vm1492_vm0, %v1057_v13 }
 0x14d   : > { %1709 = vmatprep.mubr.bf16.mxu1 %v1062_v29 }
 0x150   : > { %3253 = vmatpush3.bf16.xpose.msra.mxu0 %v3449_v49 }
 0x151   : > { %3254 = vmatprep.subr.bf16.mxu0 %v3450_v54 }
 0x153   : > { %3241 = vmatmul.mubr.msk.bf16.gmra.mrb[56].mxu0 %vm1492_vm0, %v1060_v17 }
 0x154   : > { %1710 = vmatmul.mubr.bf16.gmra.mrb[56].mxu1 %v1061_v37  ;;  %3244 = vmatprep.mubr.msk.bf16.mxu0 %vm1492_vm0, %v1063_v32 }
 0x155   : > { %1717 = vmatprep.mubr.bf16.mxu1 %v1065_v55 }
 0x158   : > { %3255 = vmatpush3.bf16.xpose.msra.mxu0 %v3450_v54 }
 0x15b   : > { %3245 = vmatmul.mubr.msk.bf16.gmra.mrb[60].mxu0 %vm1492_vm0, %v1066_v51 }
 0x15c   : > { %1718 = vmatmul.mubr.bf16.gmra.mrb[60].mxu1 %v1064_v42 }
 0x1b6   : > { %v3170_v56 = vpop.f32.mrb[0].mxu0 }
 0x1b7   : > { %v1245_v62 = vpop.f32.mrb[1].mxu0  ;;  %v1599_v59 = vpop.f32.mrb[0].mxu1 }
 0x1b8   : > { %v4731_v53 = vadd.f32 %v1599_v59, %v1245_v62  ;;  %v3171_v0 = vpop.f32.mrb[2].mxu0  ;;  %v1601_v61 = vpop.f32.mrb[1].mxu1 }
 0x1b9   : > { %v1248_v2 = vpop.f32.mrb[3].mxu0  ;;  %v1602_v44 = vpop.f32.mrb[2].mxu1 }
 0x1ba   : > { %v4733_v38 = vadd.f32 %v1602_v44, %v1248_v2  ;;  %v1604_v8 = vpop.f32.mrb[3].mxu1 }
 0x1be   : > { %v3174_v12 = vpop.f32.mrb[4].mxu0 }
 0x1bf   : > { %v1607_v57 = vpop.f32.mrb[4].mxu1  ;;  %v1261_v58 = vpop.f32.mrb[5].mxu0 }
 0x1c0   : > { %v4735_v63 = vadd.f32 %v3170_v56, %v1607_v57  ;;  %v1609_v15 = vpop.f32.mrb[5].mxu1  ;;  %v3175_v19 = vpop.f32.mrb[6].mxu0 }
 0x1c1   : > { %v1610_v60 = vpop.f32.mrb[6].mxu1  ;;  %v1264_v11 = vpop.f32.mrb[7].mxu0 }
 0x1c2   : > { %v4737_v20 = vadd.f32 %v3171_v0, %v1610_v60  ;;  %v1612_v1 = vpop.f32.mrb[7].mxu1 }
 0x1c6   : > { %v3178_v9 = vpop.f32.mrb[8].mxu0 }
 0x1c7   : > { %v1615_v3 = vpop.f32.mrb[8].mxu1  ;;  %v1277_v21 = vpop.f32.mrb[9].mxu0 }
 0x1c8   : > { %v4739_v13 = vadd.f32 %v1615_v3, %v1261_v58  ;;  %v1617_v23 = vpop.f32.mrb[9].mxu1  ;;  %v3179_v5 = vpop.f32.mrb[10].mxu0  ;;  %v4794_v3 = vld [vmem:[%s5460_s7] ss:$0 sm:$0xff] }
 0x1c9   : > { %v1618_v6 = vpop.f32.mrb[10].mxu1  ;;  %v1280_v14 = vpop.f32.mrb[11].mxu0 }
 0x1ca   : > { %v4741_v28 = vadd.f32 %v1618_v6, %v1264_v11  ;;  %v1620_v29 = vpop.f32.mrb[11].mxu1 }
 0x1ce   : > { %v3182_v4 = vpop.f32.mrb[12].mxu0 }
 0x1cf   : > { %v1623_v22 = vpop.f32.mrb[12].mxu1  ;;  %v1293_v30 = vpop.f32.mrb[13].mxu0 }
 0x1d0   : > { %v4743_v31 = vadd.f32 %v3174_v12, %v1623_v22  ;;  %v1625_v26 = vpop.f32.mrb[13].mxu1  ;;  %v3183_v34 = vpop.f32.mrb[14].mxu0 }
 0x1d1   : > { %v1626_v35 = vpop.f32.mrb[14].mxu1  ;;  %v1296_v36 = vpop.f32.mrb[15].mxu0 }
 0x1d2   : > { %v4745_v40 = vadd.f32 %v3175_v19, %v1626_v35  ;;  %v1628_v27 = vpop.f32.mrb[15].mxu1 }
 0x1d6   : > { %v4747_v24 = vpop.f32.mrb[16].mxu0 }
 0x1d7   : > { %v1631_v7 = vpop.f32.mrb[16].mxu1  ;;  %v1309_v39 = vpop.f32.mrb[17].mxu0 }
 0x1d8   : > { %v4749_v47 = vadd.f32 %v1631_v7, %v1277_v21  ;;  %v1633_v50 = vpop.f32.mrb[17].mxu1  ;;  %v4751_v16 = vpop.f32.mrb[18].mxu0 }
 0x1d9   : > { %v1634_v17 = vpop.f32.mrb[18].mxu1  ;;  %v1312_v10 = vpop.f32.mrb[19].mxu0 }
 0x1da   : > { %v4753_v45 = vadd.f32 %v1634_v17, %v1280_v14  ;;  %v1636_v37 = vpop.f32.mrb[19].mxu1 }
 0x1de   : > { %v4755_v32 = vpop.f32.mrb[20].mxu0 }
 0x1df   : > { %v1639_v41 = vpop.f32.mrb[20].mxu1  ;;  %v4757_v52 = vpop.f32.mrb[21].mxu0 }
 0x1e0   : > { %v4759_v55 = vadd.f32 %v3178_v9, %v1639_v41  ;;  %v1641_v25 = vpop.f32.mrb[21].mxu1  ;;  %v4761_v46 = vpop.f32.mrb[22].mxu0 }
 0x1e1   : > { %v1642_v33 = vpop.f32.mrb[22].mxu1  ;;  %v4763_v43 = vpop.f32.mrb[23].mxu0 }
 0x1e2   : > { %v4765_v51 = vadd.f32 %v3179_v5, %v1642_v33  ;;  %v1644_v42 = vpop.f32.mrb[23].mxu1 }
 0x1e6   : > { %v4767_v48 = vpop.f32.mrb[24].mxu0 }
 0x1e7   : > { %v1647_v18 = vpop.f32.mrb[24].mxu1  ;;  %v4769_v49 = vpop.f32.mrb[25].mxu0 }
 0x1e8   : > { %v4771_v54 = vadd.f32 %v1647_v18, %v1293_v30  ;;  %v1649_v56 = vpop.f32.mrb[25].mxu1  ;;  %v4773_v62 = vpop.f32.mrb[26].mxu0 }
 0x1e9   : > { %v1650_v59 = vpop.f32.mrb[26].mxu1  ;;  %v4775_v0 = vpop.f32.mrb[27].mxu0 }
 0x1ea   : > { %v4777_v61 = vadd.f32 %v1650_v59, %v1296_v36  ;;  %v1652_v2 = vpop.f32.mrb[27].mxu1 }
 0x1ee   : > { %v4779_v44 = vpop.f32.mrb[28].mxu0 }
 0x1ef   : > { %v1655_v8 = vpop.f32.mrb[28].mxu1  ;;  %v4781_v12 = vpop.f32.mrb[29].mxu0 }
 0x1f0   : > { %v4783_v57 = vadd.f32 %v3182_v4, %v1655_v8  ;;  %v1657_v58 = vpop.f32.mrb[29].mxu1  ;;  %v4785_v15 = vpop.f32.mrb[30].mxu0 }
 0x1f1   : > { %v1658_v19 = vpop.f32.mrb[30].mxu1  ;;  %v4787_v60 = vpop.f32.mrb[31].mxu0 }
 0x1f2   : > { %v4789_v11 = vadd.f32 %v3183_v34, %v1658_v19  ;;  %v1660_v1 = vpop.f32.mrb[31].mxu1 }
 0x1f6   : > { %v3218_v9 = vpop.f32.mrb[32].mxu0 }
 0x1f7   : > { %v1663_v21 = vpop.f32.mrb[32].mxu1  ;;  %v1769_v23 = vadd.f32 %v3218_v9, %v4735_v63  ;;  %v1760_v5 = vpop.f32.mrb[33].mxu0 }
 0x1f8   : > { %v4797_v6 = vadd.f32 %v1663_v21, %v1309_v39  ;;  %v1665_v14 = vpop.f32.mrb[33].mxu1  ;;  %v1761_v29 = vadd.f32 %v1760_v5, %v4731_v53  ;;  %v3219_v4 = vpop.f32.mrb[34].mxu0 }
 0x1f9   : > { %v4801_v22 = vadd.f32 %v4794_v3, %v1769_v23  ;;  %v1666_v30 = vpop.f32.mrb[34].mxu1  ;;  %v1772_v26 = vadd.f32 %v3219_v4, %v4737_v20  ;;  %v1763_v34 = vpop.f32.mrb[35].mxu0 }
 0x1fa   : > { %v4805_v35 = vadd.f32 %v4794_v3, %v1761_v29  ;;  %v4807_v36 = vadd.f32 %v1666_v30, %v1312_v10  ;;  %v1764_v63 = vadd.f32 %v1763_v34, %v4733_v38  ;;  %v1668_v27 = vpop.f32.mrb[35].mxu1 }
 0x1fb   : > { %v1960_v7 = vmin.f32 %v4801_v22, 0.0  ;;  %v4812_v53 = vadd.f32 %v4794_v3, %v1772_v26  ;;  %vm1928_vm1 = vcmp.gt.f32.partialorder %v4801_v22, 0.0 }
 0x1fc   : > { %v1958_v39 = vmin.f32 %v4805_v35, 0.0  ;;  %v4816_v50 = vadd.f32 %v4794_v3, %v1764_v63  ;;  %vm1926_vm4 = vcmp.gt.f32.partialorder %v4805_v35, 0.0 }
 0x1fd   : > { %v1994_v20 = vmul.f32 1.442695, %v1960_v7  ;;  %v1961_v17 = vmin.f32 %v4812_v53, 0.0  ;;  %vm1929_vm2 = vcmp.gt.f32.partialorder %v4812_v53, 0.0 }
 0x1fe   : > { %v1959_v37 = vmin.f32 %v4816_v50, 0.0  ;;  %v3222_v10 = vpop.f32.mrb[36].mxu0  ;;  %v1990_v42 = vmul.f32 1.442695, %v1958_v39  ;;  %vm1927_vm3 = vcmp.gt.f32.partialorder %v4816_v50, 0.0 }
 0x1ff   : > { %3451 = vpow2.f32 %v1994_v20  ;;  %v1996_v41 = vmul.f32 1.442695, %v1961_v17  ;;  %v1671_v38 = vpop.f32.mrb[36].mxu1  ;;  %v1785_v25 = vadd.f32 %v3222_v10, %v4743_v31  ;;  %v1776_v33 = vpop.f32.mrb[37].mxu0 }
 0x200   : > { %v1992_v18 = vmul.f32 1.442695, %v1959_v37  ;;  %v4822_v56 = vadd.f32 %v4747_v24, %v1671_v38  ;;  %v1673_v59 = vpop.f32.mrb[37].mxu1  ;;  %v1777_v2 = vadd.f32 %v1776_v33, %v4739_v13  ;;  %v3223_v8 = vpop.f32.mrb[38].mxu0 }
 0x201   : > { %3453 = vpow2.f32 %v1996_v41  ;;  %v4826_v58 = vadd.f32 %v4794_v3, %v1785_v25  ;;  %v1674_v19 = vpop.f32.mrb[38].mxu1  ;;  %v1788_v1 = vadd.f32 %v3223_v8, %v4745_v40  ;;  %v1779_v9 = vpop.f32.mrb[39].mxu0 }
 0x202   : > { %3455 = vpow2.f32 %v1992_v18  ;;  %v4830_v31 = vadd.f32 %v4794_v3, %v1777_v2  ;;  %v4833_v21 = vadd.f32 %v4751_v16, %v1674_v19  ;;  %v1780_v24 = vadd.f32 %v1779_v9, %v4741_v28  ;;  %v1676_v23 = vpop.f32.mrb[39].mxu1 }
 0x203   : > { %v4837_v13 = vadd.f32 %v4794_v3, %v1788_v1  ;;  %3457 = vpow2.f32 %v1990_v42  ;;  %v1964_v40 = vmin.f32 %v4826_v58, 0.0  ;;  %vm1932_vm7 = vcmp.gt.f32.partialorder %v4826_v58, 0.0 }
 0x204   : > { %v1962_v5 = vmin.f32 %v4830_v31, 0.0  ;;  %v4841_v14 = vadd.f32 %v4794_v3, %v1780_v24  ;;  %vm1930_vm5 = vcmp.gt.f32.partialorder %v4830_v31, 0.0 }
 0x205   : > { %v1965_v16 = vmin.f32 %v4837_v13, 0.0  ;;  %v2002_v37 = vmul.f32 1.442695, %v1964_v40  ;;  %vm1933_vm8 = vcmp.gt.f32.partialorder %v4837_v13, 0.0 }
 0x206   : > { %v1998_v29 = vmul.f32 1.442695, %v1962_v5  ;;  %v1963_v4 = vmin.f32 %v4841_v14, 0.0  ;;  %v3226_v30 = vpop.f32.mrb[40].mxu0  ;;  %vm1931_vm6 = vcmp.gt.f32.partialorder %v4841_v14, 0.0 }
 0x207   : > { %v1679_v26 = vpop.f32.mrb[40].mxu1  ;;  %v1801_v28 = vadd.f32 %v3226_v30, %v4759_v55  ;;  %v1792_v34 = vpop.f32.mrb[41].mxu0  ;;  %v2004_v18 = vmul.f32 1.442695, %v1965_v16 }
 0x208   : > { %v2000_v63 = vmul.f32 1.442695, %v1963_v4  ;;  %v4848_v27 = vadd.f32 %v1679_v26, %v4757_v52  ;;  %v1681_v7 = vpop.f32.mrb[41].mxu1  ;;  %v1793_v39 = vadd.f32 %v1792_v34, %v4749_v47  ;;  %v3227_v20 = vpop.f32.mrb[42].mxu0  ;;  %3459 = vpow2.f32 %v1998_v29 }
 0x209   : > { %v3452_v17 = vpop.eup %3451  ;;  %v4852_v10 = vadd.f32 %v4794_v3, %v1801_v28  ;;  %v1682_v41 = vpop.f32.mrb[42].mxu1  ;;  %v1804_v38 = vadd.f32 %v3227_v20, %v4765_v51 }
 0x20a   : > { %v1795_v25 = vpop.f32.mrb[43].mxu0  ;;  %v2942_v33 = vadd.f32 -1.0, %v3452_v17  ;;  %v4856_v55 = vadd.f32 %v4794_v3, %v1793_v39  ;;  %v4859_v52 = vadd.f32 %v1682_v41, %v4763_v43  ;;  %v1684_v42 = vpop.f32.mrb[43].mxu1  ;;  %3461 = vpow2.f32 %v2000_v63 }
 0x20b   : > { %v3454_v47 = vpop.eup %3453  ;;  %v1796_v59 = vadd.f32 %v1795_v25, %v4753_v45  ;;  %v4863_v19 = vadd.f32 %v4794_v3, %v1804_v38  ;;  %v1968_v51 = vmin.f32 %v4852_v10, 0.0  ;;  %3463 = vpow2.f32 %v2002_v37 }
 0x20c   : > { %v3456_v2 = vpop.eup %3455  ;;  %v2943_v8 = vadd.f32 -1.0, %v3454_v47  ;;  %v4872_v9 = vsel %vm1928_vm1, %v4801_v22, %v2942_v33  ;;  %v1966_v24 = vmin.f32 %v4856_v55, 0.0  ;;  %3465 = vpow2.f32 %v2004_v18 }
 0x20d   : > { %v4869_v43 = vadd.f32 %v4794_v3, %v1796_v59  ;;  %v3458_v1 = vpop.eup %3457  ;;  %v2941_v4 = vadd.f32 -1.0, %v3456_v2  ;;  %v1969_v30 = vmin.f32 %v4863_v19, 0.0  ;;  %v2010_v34 = vmul.f32 1.442695, %v1968_v51 }
 0x20e   : > { %v4875_v45 = vsel %vm1929_vm2, %v4812_v53, %v2943_v8  ;;  %v3230_v23 = vpop.f32.mrb[44].mxu0  ;;  %v2940_v17 = vadd.f32 -1.0, %v3458_v1  ;;  %v2006_v37 = vmul.f32 1.442695, %v1966_v24  ;;  %vm1934_vm9 = vcmp.gt.f32.partialorder %v4856_v55, 0.0 }
 0x20f   : > { %v2119_v5 = vpack.c.bf16 %v4875_v45, %v4872_v9  ;;  %v1687_v40 = vpop.f32.mrb[44].mxu1  ;;  %v1808_v29 = vpop.f32.mrb[45].mxu0  ;;  %v1967_v22 = vmin.f32 %v4869_v43, 0.0  ;;  %v1817_v16 = vadd.f32 %v3230_v23, %v4783_v57  ;;  %v2012_v47 = vmul.f32 1.442695, %v1969_v30 }
 0x210   : > { %v4884_v53 = vadd.f32 %v4755_v32, %v1687_v40  ;;  %v1689_v26 = vpop.f32.mrb[45].mxu1  ;;  %v3231_v28 = vpop.f32.mrb[46].mxu0  ;;  %v1809_v63 = vadd.f32 %v1808_v29, %v4771_v54  ;;  %3467 = vpow2.f32 %v2010_v34  ;;  %v2086_v59 = vsel %vm1926_vm4, %v4805_v35, %v2940_v17 }
 0x211   : > { %v1690_v7 = vpop.f32.mrb[46].mxu1  ;;  %v1820_v39 = vadd.f32 %v3231_v28, %v4789_v11  ;;  %v1811_v20 = vpop.f32.mrb[47].mxu0  ;;  %v4890_v41 = vadd.f32 %v4794_v3, %v1817_v16  ;;  %v2008_v25 = vmul.f32 1.442695, %v1967_v22  ;;  %v2087_v11 = vsel %vm1927_vm3, %v4816_v50, %v2941_v4 }
 0x212   : > { %v4893_v38 = vadd.f32 %v4761_v46, %v1690_v7  ;;  %v1812_v32 = vadd.f32 %v1811_v20, %v4777_v61  ;;  %v1692_v57 = vpop.f32.mrb[47].mxu1  ;;  %v4897_v33 = vadd.f32 %v4794_v3, %v1809_v63  ;;  %v3460_v42 = vpop.eup %3459  ;;  %3469 = vpow2.f32 %v2006_v37 }
 0x213   : > { %v4900_v54 = vadd.f32 %v4794_v3, %v1820_v39  ;;  %v1972_v46 = vmin.f32 %v4890_v41, 0.0  ;;  %v2118_v8 = vpack.c.bf16 %v2087_v11, %v2086_v59  ;;  %3471 = vpow2.f32 %v2008_v25 }
 0x214   : > { %v4908_v61 = vadd.f32 %v4794_v3, %v1812_v32  ;;  %v1970_v18 = vmin.f32 %v4897_v33, 0.0  ;;  %v3462_v2 = vpop.eup %3461  ;;  %v2944_v23 = vadd.f32 -1.0, %v3460_v42  ;;  %3473 = vpow2.f32 %v2012_v47 }
 0x215   : > { %v1973_v50 = vmin.f32 %v4900_v54, 0.0  ;;  %v3464_v40 = vpop.eup %3463  ;;  %v2018_v35 = vmul.f32 1.442695, %v1972_v46  ;;  %3256 = vmatprep.mubr.bf16.mxu0 %v2118_v8  ;;  %v2945_v7 = vadd.f32 -1.0, %v3462_v2  ;;  %vm1936_vm10 = vcmp.gt.f32.partialorder %v4852_v10, 0.0 }
 0x216   : > { %v3234_v51 = vpop.f32.mrb[48].mxu0  ;;  %v1971_v1 = vmin.f32 %v4908_v61, 0.0  ;;  %v3466_v16 = vpop.eup %3465  ;;  %v2014_v26 = vmul.f32 1.442695, %v1970_v18  ;;  %3257 = vmatmul.mubr.bf16.vlgmr.msra.gmra.mrb[64].mxu0 %v2119_v5  ;;  %v2946_v42 = vadd.f32 -1.0, %v3464_v40  ;;  %vm1935_vm11 = vcmp.gt.f32.partialorder %v4869_v43, 0.0 }
 0x217   : > { %v1695_v9 = vpop.f32.mrb[48].mxu1  ;;  %v1833_v45 = vadd.f32 %v3234_v51, %v4822_v56  ;;  %v1824_v24 = vpop.f32.mrb[49].mxu0  ;;  %v2020_v39 = vmul.f32 1.442695, %v1973_v50  ;;  %3475 = vpow2.f32 %v2018_v35  ;;  %v2947_v59 = vadd.f32 -1.0, %v3466_v16 }
 0x218   : > { %v4919_v29 = vadd.f32 %v1695_v9, %v4769_v49  ;;  %v1697_v4 = vpop.f32.mrb[49].mxu1  ;;  %v1825_v30 = vadd.f32 %v1824_v24, %v4797_v6  ;;  %v3235_v22 = vpop.f32.mrb[50].mxu0  ;;  %v2016_v37 = vmul.f32 1.442695, %v1971_v1  ;;  %3477 = vpow2.f32 %v2014_v26 }
 0x219   : > { %v4923_v56 = vadd.f32 %v4794_v3, %v1833_v45  ;;  %v1698_v28 = vpop.f32.mrb[50].mxu1  ;;  %v1836_v34 = vadd.f32 %v3235_v22, %v4833_v21  ;;  %v1827_v63 = vpop.f32.mrb[51].mxu0  ;;  %v2090_v21 = vsel %vm1930_vm5, %v4830_v31, %v2944_v23  ;;  %3479 = vpow2.f32 %v2020_v39 }
 0x21a   : > { %v4927_v20 = vadd.f32 %v4794_v3, %v1825_v30  ;;  %v4930_v49 = vadd.f32 %v1698_v28, %v4775_v0  ;;  %v1828_v6 = vadd.f32 %v1827_v63, %v4807_v36  ;;  %v1700_v17 = vpop.f32.mrb[51].mxu1  ;;  %v2091_v0 = vsel %vm1931_vm6, %v4841_v14, %v2945_v7  ;;  %v3468_v46 = vpop.eup %3467 }
 0x21b   : > { %v1976_v5 = vmin.f32 %v4923_v56, 0.0  ;;  %v4935_v32 = vadd.f32 %v4794_v3, %v1836_v34  ;;  %v2120_v11 = vpack.c.bf16 %v2091_v0, %v2090_v21  ;;  %3481 = vpow2.f32 %v2016_v37 }
 0x21c   : > { %v1974_v57 = vmin.f32 %v4927_v20, 0.0  ;;  %v4942_v25 = vadd.f32 %v4794_v3, %v1828_v6  ;;  %v3470_v8 = vpop.eup %3469  ;;  %v2092_v23 = vsel %vm1932_vm7, %v4826_v58, %v2946_v42  ;;  %v2950_v37 = vadd.f32 -1.0, %v3468_v46 }
 0x21d   : > { %v2026_v36 = vmul.f32 1.442695, %v1976_v5  ;;  %v1977_v31 = vmin.f32 %v4935_v32, 0.0  ;;  %3260 = vmatprep.mubr.bf16.mxu0 %v2120_v11  ;;  %v3472_v24 = vpop.eup %3471  ;;  %v2948_v39 = vadd.f32 -1.0, %v3470_v8  ;;  %vm1937_vm12 = vcmp.gt.f32.partialorder %v4863_v19, 0.0 }
 0x21e   : > { %v3238_v47 = vpop.f32.mrb[52].mxu0  ;;  %v1975_v18 = vmin.f32 %v4942_v25, 0.0  ;;  %v2022_v51 = vmul.f32 1.442695, %v1974_v57  ;;  %v3474_v22 = vpop.eup %3473  ;;  %v2949_v6 = vadd.f32 -1.0, %v3472_v24  ;;  %vm1940_vm13 = vcmp.gt.f32.partialorder %v4890_v41, 0.0 }
 0x21f   : > { %v1703_v2 = vpop.f32.mrb[52].mxu1  ;;  %v1849_v14 = vadd.f32 %v3238_v47, %v4884_v53  ;;  %v1840_v50 = vpop.f32.mrb[53].mxu0  ;;  %3483 = vpow2.f32 %v2026_v36  ;;  %v2093_v53 = vsel %vm1933_vm8, %v4837_v13, %v2947_v59  ;;  %vm1938_vm14 = vcmp.gt.f32.partialorder %v4897_v33, 0.0 }
 0x220   : > { %v1704_v1 = vadd.f32 %v4767_v48, %v1703_v2  ;;  %v1705_v9 = vpop.f32.mrb[53].mxu1  ;;  %v3239_v45 = vpop.f32.mrb[54].mxu0  ;;  %v1841_v35 = vadd.f32 %v1840_v50, %v4848_v27  ;;  %v2028_v48 = vmul.f32 1.442695, %v1977_v31  ;;  %v2121_v16 = vpack.c.bf16 %v2093_v53, %v2092_v23 }
 0x221   : > { %v4962_v40 = vadd.f32 %v4794_v3, %v1849_v14  ;;  %v1706_v4 = vpop.f32.mrb[54].mxu1  ;;  %v1843_v30 = vpop.f32.mrb[55].mxu0  ;;  %v1852_v28 = vadd.f32 %v3239_v45, %v4893_v38  ;;  %v2024_v58 = vmul.f32 1.442695, %v1975_v18  ;;  %3485 = vpow2.f32 %v2022_v51 }
 0x222   : > { %v1707_v26 = vadd.f32 %v4773_v62, %v1706_v4  ;;  %v1708_v34 = vpop.f32.mrb[55].mxu1  ;;  %v4969_v13 = vadd.f32 %v4794_v3, %v1841_v35  ;;  %v1844_v7 = vadd.f32 %v1843_v30, %v4859_v52  ;;  %3261 = vmatmul.mubr.bf16.gmra.mrb[68].mxu0 %v2121_v16  ;;  %v3476_v5 = vpop.eup %3475  ;;  %3487 = vpow2.f32 %v2028_v48 }
 0x223   : > { %v1980_v63 = vmin.f32 %v4962_v40, 0.0  ;;  %v4973_v27 = vadd.f32 %v4794_v3, %v1852_v28  ;;  %v2095_v21 = vsel %vm1935_vm11, %v4869_v43, %v2949_v6  ;;  %v3478_v0 = vpop.eup %3477  ;;  %3489 = vpow2.f32 %v2024_v58 }
 0x224   : > { %v1978_v62 = vmin.f32 %v4969_v13, 0.0  ;;  %v4977_v38 = vadd.f32 %v4794_v3, %v1844_v7  ;;  %v2094_v31 = vsel %vm1934_vm9, %v4856_v55, %v2948_v39  ;;  %v3480_v46 = vpop.eup %3479  ;;  %v2951_v43 = vadd.f32 -1.0, %v3474_v22 }
 0x225   : > { %v2034_v17 = vmul.f32 1.442695, %v1980_v63  ;;  %v1981_v52 = vmin.f32 %v4973_v27, 0.0  ;;  %v2122_v18 = vpack.c.bf16 %v2095_v21, %v2094_v31  ;;  %v3482_v14 = vpop.eup %3481  ;;  %v2096_v8 = vsel %vm1936_vm10, %v4852_v10, %v2950_v37 }
 0x226   : > { %v3242_v57 = vpop.f32.mrb[56].mxu0  ;;  %v2030_v36 = vmul.f32 1.442695, %v1978_v62  ;;  %v1979_v11 = vmin.f32 %v4977_v38, 0.0  ;;  %vm1941_vm15 = vcmp.gt.f32.partialorder %v4900_v54, 0.0  ;;  %v2097_v53 = vsel %vm1937_vm12, %v4863_v19, %v2951_v43 }
 0x227   : > { %v1711_v42 = vpop.f32.mrb[56].mxu1  ;;  %v1856_v47 = vpop.f32.mrb[57].mxu0  ;;  %3491 = vpow2.f32 %v2034_v17  ;;  %v2036_v50 = vmul.f32 1.442695, %v1981_v52  ;;  %v1865_v51 = vadd.f32 %v3242_v57, %v1704_v1  ;;  %3264 = vmatprep.mubr.bf16.mxu0 %v2122_v18  ;;  %v2952_v16 = vadd.f32 -1.0, %v3478_v0 }
 0x228   : > { %v1713_v59 = vpop.f32.mrb[57].mxu1  ;;  %v3243_v2 = vpop.f32.mrb[58].mxu0  ;;  %v1712_v55 = vadd.f32 %v1711_v42, %v4781_v12  ;;  %v2032_v23 = vmul.f32 1.442695, %v1979_v11  ;;  %v1857_v35 = vadd.f32 %v1856_v47, %v4919_v29  ;;  %3493 = vpow2.f32 %v2030_v36 }
 0x229   : > { %v1714_v9 = vpop.f32.mrb[58].mxu1  ;;  %v1859_v45 = vpop.f32.mrb[59].mxu0  ;;  %v2123_v12 = vpack.c.bf16 %v2097_v53, %v2096_v8  ;;  %v5003_v1 = vadd.f32 %v4794_v3, %v1865_v51  ;;  %v1868_v30 = vadd.f32 %v3243_v2, %v1707_v26  ;;  %v2953_v28 = vadd.f32 -1.0, %v3482_v14 }
 0x22a   : > { %v4994_v24 = vpop.eup %3483  ;;  %v1715_v4 = vadd.f32 %v1714_v9, %v4787_v60  ;;  %v1716_v10 = vpop.f32.mrb[59].mxu1  ;;  %v5006_v22 = vadd.f32 %v4794_v3, %v1857_v35  ;;  %v1860_v48 = vadd.f32 %v1859_v45, %v4930_v49  ;;  %3495 = vpow2.f32 %v2036_v50 }
 0x22b   : > { %3265 = vmatmul.mubr.bf16.gmra.mrb[72].mxu0 %v2123_v12  ;;  %v1984_v19 = vmin.f32 %v5003_v1, 0.0  ;;  %v5011_v60 = vadd.f32 %v4794_v3, %v1868_v30  ;;  %v2954_v29 = vadd.f32 -1.0, %v3476_v5  ;;  %v3486_v34 = vpop.eup %3485  ;;  %vm1939_vm1 = vcmp.gt.f32.partialorder %v4908_v61, 0.0 }
 0x22c   : > { %3497 = vpow2.f32 %v2032_v23  ;;  %v1982_v26 = vmin.f32 %v5006_v22, 0.0  ;;  %v5016_v58 = vadd.f32 %v4794_v3, %v1860_v48  ;;  %vm1942_vm2 = vcmp.gt.f32.partialorder %v4927_v20, 0.0  ;;  %v3488_v37 = vpop.eup %3487 }
 0x22d   : > { %v2042_v63 = vmul.f32 1.442695, %v1984_v19  ;;  %v1985_v7 = vmin.f32 %v5011_v60, 0.0  ;;  %v2098_v39 = vsel %vm1938_vm14, %v4897_v33, %v2952_v16  ;;  %v2099_v6 = vsel %vm1939_vm1, %v4908_v61, %v2953_v28  ;;  %v3490_v36 = vpop.eup %3489 }
 0x22e   : > { %v3246_v49 = vpop.f32.mrb[60].mxu0  ;;  %vm1943_vm3 = vcmp.gt.f32.partialorder %v4942_v25, 0.0  ;;  %v2038_v5 = vmul.f32 1.442695, %v1982_v26  ;;  %v1983_v52 = vmin.f32 %v5016_v58, 0.0  ;;  %v2124_v21 = vpack.c.bf16 %v2099_v6, %v2098_v39 }
 0x22f   : > { %v1719_v17 = vpop.f32.mrb[60].mxu1  ;;  %v1872_v62 = vpop.f32.mrb[61].mxu0  ;;  %vm1944_vm4 = vcmp.gt.f32.partialorder %v4923_v56, 0.0  ;;  %3499 = vpow2.f32 %v2042_v63  ;;  %v2044_v11 = vmul.f32 1.442695, %v1985_v7  ;;  %v2955_v31 = vadd.f32 -1.0, %v3480_v46 }
 0x230   : > { %v1721_v57 = vpop.f32.mrb[61].mxu1  ;;  %v3247_v0 = vpop.f32.mrb[62].mxu0  ;;  %v2100_v33 = vsel %vm1940_vm13, %v4890_v41, %v2954_v29  ;;  %3501 = vpow2.f32 %v2038_v5  ;;  %v2040_v18 = vmul.f32 1.442695, %v1983_v52  ;;  %3268 = vmatprep.mubr.bf16.mxu0 %v2124_v21  ;;  %v1720_v43 = vadd.f32 %v4779_v44, %v1719_v17 }
 0x231   : > { %v1722_v61 = vpop.f32.mrb[62].mxu1  ;;  %v1875_v42 = vpop.f32.mrb[63].mxu0  ;;  %v1873_v59 = vadd.f32 %v1872_v62, %v1712_v55  ;;  %vm1945_vm5 = vcmp.gt.f32.partialorder %v4935_v32, 0.0  ;;  %3503 = vpow2.f32 %v2044_v11  ;;  %v2101_v46 = vsel %vm1941_vm15, %v4900_v54, %v2955_v31 }
 0x232   : > { %v3492_v47 = vpop.eup %3491  ;;  %v1724_v2 = vpop.f32.mrb[63].mxu1  ;;  %v1723_v14 = vadd.f32 %v4785_v15, %v1722_v61  ;;  %v1876_v41 = vadd.f32 %v1875_v42, %v1715_v4  ;;  %3505 = vpow2.f32 %v2040_v18  ;;  %v2125_v50 = vpack.c.bf16 %v2101_v46, %v2100_v33 }
 0x233   : > { %v1881_v8 = vadd.f32 %v3246_v49, %v1720_v43  ;;  %v5037_v51 = vadd.f32 %v4794_v3, %v1873_v59  ;;  %v3494_v9 = vpop.eup %3493  ;;  %v2956_v45 = vadd.f32 -1.0, %v3486_v34  ;;  %v2957_v23 = vadd.f32 -1.0, %v3490_v36 }
 0x234   : > { %v1884_v44 = vadd.f32 %v3247_v0, %v1723_v14  ;;  %v5040_v55 = vadd.f32 %v4794_v3, %v1876_v41  ;;  %vm1948_vm6 = vcmp.gt.f32.partialorder %v4962_v40, 0.0  ;;  %3269 = vmatmul.mubr.bf16.gmra.mrb[76].mxu0 %v2125_v50  ;;  %v2958_v53 = vadd.f32 -1.0, %v4994_v24  ;;  %v3496_v35 = vpop.eup %3495 }
 0x235   : > { %v5044_v54 = vadd.f32 %v4794_v3, %v1881_v8  ;;  %v1986_v15 = vmin.f32 %v5037_v51, 0.0  ;;  %vm1946_vm7 = vcmp.gt.f32.partialorder %v4969_v13, 0.0  ;;  %vm1949_vm8 = vcmp.gt.f32.partialorder %v4973_v27, 0.0 }
 0x236   : > { %v5051_v4 = vadd.f32 %v4794_v3, %v1884_v44  ;;  %v1987_v10 = vmin.f32 %v5040_v55, 0.0  ;;  %v3498_v12 = vpop.eup %3497  ;;  %v2102_v16 = vsel %vm1942_vm2, %v4927_v20, %v2956_v45  ;;  %v2103_v24 = vsel %vm1943_vm3, %v4942_v25, %v2957_v23 }
 0x237   : > { %v1988_v30 = vmin.f32 %v5044_v54, 0.0  ;;  %v2046_v48 = vmul.f32 1.442695, %v1986_v15  ;;  %vm1947_vm9 = vcmp.gt.f32.partialorder %v4977_v38, 0.0  ;;  %v2126_v19 = vpack.c.bf16 %v2103_v24, %v2102_v16 }
 0x238   : > { %v1989_v28 = vmin.f32 %v5051_v4, 0.0  ;;  %v2048_v3 = vmul.f32 1.442695, %v1987_v10  ;;  %v2959_v34 = vadd.f32 -1.0, %v3488_v37  ;;  %v2104_v26 = vsel %vm1944_vm4, %v4923_v56, %v2958_v53 }
 0x239   : > { %v2050_v29 = vmul.f32 1.442695, %v1988_v30  ;;  %3507 = vpow2.f32 %v2046_v48  ;;  %v3500_v49 = vpop.eup %3499  ;;  %3272 = vmatprep.mubr.bf16.mxu0 %v2126_v19  ;;  %v2960_v20 = vadd.f32 -1.0, %v3494_v9  ;;  %v2961_v7 = vadd.f32 -1.0, %v3498_v12  ;;  %v5107_v9 = vld [vmem:[%s5462_s9] ss:$0 sm:$0xff] }
 0x23a   : > { %v2052_v63 = vmul.f32 1.442695, %v1989_v28  ;;  %3509 = vpow2.f32 %v2048_v3  ;;  %v3502_v25 = vpop.eup %3501  ;;  %v2105_v39 = vsel %vm1945_vm5, %v4935_v32, %v2959_v34  ;;  %v2962_v6 = vadd.f32 -1.0, %v3492_v47 }
 0x23b   : > { %3511 = vpow2.f32 %v2050_v29  ;;  %v2963_v17 = vadd.f32 -1.0, %v3496_v35  ;;  %v3504_v62 = vpop.eup %3503  ;;  %v2127_v37 = vpack.c.bf16 %v2105_v39, %v2104_v26  ;;  %v2106_v56 = vsel %vm1946_vm7, %v4969_v13, %v2960_v20 }
 0x23c   : > { %3513 = vpow2.f32 %v2052_v63  ;;  %v2107_v5 = vsel %vm1947_vm9, %v4977_v38, %v2961_v7  ;;  %v3506_v52 = vpop.eup %3505  ;;  %v2108_v57 = vsel %vm1948_vm6, %v4962_v40, %v2962_v6  ;;  %v2964_v0 = vadd.f32 -1.0, %v3502_v25 }
 0x23d   : > { %v2128_v21 = vpack.c.bf16 %v2107_v5, %v2106_v56  ;;  %v2109_v32 = vsel %vm1949_vm8, %v4973_v27, %v2963_v17  ;;  %3273 = vmatmul.mubr.bf16.gmra.mrb[80].mxu0 %v2127_v37  ;;  %v2965_v11 = vadd.f32 -1.0, %v3506_v52  ;;  %v2966_v31 = vadd.f32 -1.0, %v3500_v49 }
 0x23e   : > { %v2129_v36 = vpack.c.bf16 %v2109_v32, %v2108_v57  ;;  %v2967_v13 = vadd.f32 -1.0, %v3504_v62  ;;  %vm1952_vm10 = vcmp.gt.f32.partialorder %v5003_v1, 0.0  ;;  %vm1950_vm11 = vcmp.gt.f32.partialorder %v5006_v22, 0.0 }
 0x23f   : > { %vm1953_vm12 = vcmp.gt.f32.partialorder %v5011_v60, 0.0  ;;  %vm1951_vm13 = vcmp.gt.f32.partialorder %v5016_v58, 0.0  ;;  %3276 = vmatprep.mubr.bf16.mxu0 %v2128_v21  ;;  %v2110_v40 = vsel %vm1950_vm11, %v5006_v22, %v2964_v0  ;;  %v2112_v27 = vsel %vm1952_vm10, %v5003_v1, %v2966_v31 }
 0x240   : > { %v2111_v38 = vsel %vm1951_vm13, %v5016_v58, %v2965_v11  ;;  %v2113_v33 = vsel %vm1953_vm12, %v5011_v60, %v2967_v13  ;;  %vm1954_vm14 = vcmp.gt.f32.partialorder %v5037_v51, 0.0  ;;  %vm1955_vm15 = vcmp.gt.f32.partialorder %v5040_v55, 0.0 }
 0x241   : > { %v2130_v61 = vpack.c.bf16 %v2111_v38, %v2110_v40  ;;  %v2131_v42 = vpack.c.bf16 %v2113_v33, %v2112_v27  ;;  %vm1956_vm1 = vcmp.gt.f32.partialorder %v5044_v54, 0.0  ;;  %vm1957_vm2 = vcmp.gt.f32.partialorder %v5051_v4, 0.0 }
 0x243   : > { %v3508_v47 = vpop.eup %3507 }
 0x244   : > { %v3510_v18 = vpop.eup %3509  ;;  %v2968_v43 = vadd.f32 -1.0, %v3508_v47 }
 0x245   : > { %v3512_v59 = vpop.eup %3511  ;;  %v2969_v2 = vadd.f32 -1.0, %v3510_v18  ;;  %3277 = vmatmul.mubr.bf16.gmra.mrb[84].mxu0 %v2129_v36 }
 0x246   : > { %v3514_v46 = vpop.eup %3513  ;;  %v2970_v22 = vadd.f32 -1.0, %v3512_v59  ;;  %3280 = vmatprep.mubr.bf16.mxu0 %v2130_v61  ;;  %v2114_v58 = vsel %vm1954_vm14, %v5037_v51, %v2968_v43  ;;  %v5100_v51 = vld [vmem:[%s5463_s10] sm:$0x1] }
 0x247   : > { %v2115_v1 = vsel %vm1955_vm15, %v5040_v55, %v2969_v2  ;;  %v2971_v60 = vadd.f32 -1.0, %v3514_v46  ;;  %3150 = vmatprep.mubr.msk.f32.mxu1 %vm1492_vm0, %v5100_v51 }
 0x248   : > { %v2132_v14 = vpack.c.bf16 %v2115_v1, %v2114_v58  ;;  %v2116_v41 = vsel %vm1956_vm1, %v5044_v54, %v2970_v22 }
 0x249   : > { %v2117_v50 = vsel %vm1957_vm2, %v5051_v4, %v2971_v60 }
 0x24a   : > { %v2133_v8 = vpack.c.bf16 %v2117_v50, %v2116_v41 }
 0x24d   : > { %3281 = vmatmul.mubr.bf16.gmra.mrb[88].mxu0 %v2131_v42 }
 0x24e   : > { %3284 = vmatprep.mubr.bf16.mxu0 %v2132_v14 }
 0x255   : > { %3285 = vmatmul.mubr.bf16.gmra.mrb[92].mxu0 %v2133_v8 }
 0x2e9   : > { %v3258_v44 = vpop.f32.mrb[64].mxu0 }
 0x2ea   : > { %v2216_v55 = vadd.f32 %v3258_v44, %v5107_v9  ;;  %v2207_v45 = vpop.f32.mrb[65].mxu0 }
 0x2eb   : > { %v2208_v23 = vadd.f32 %v5107_v9, %v2207_v45  ;;  %v3259_v54 = vpop.f32.mrb[66].mxu0 }
 0x2ec   : > { %v2368_v15 = vmin.f32 %v2216_v55, 0.0  ;;  %v2219_v53 = vadd.f32 %v3259_v54, %v5107_v9  ;;  %v2210_v35 = vpop.f32.mrb[67].mxu0  ;;  %vm2336_vm3 = vcmp.gt.f32.partialorder %v2216_v55, 0.0 }
 0x2ed   : > { %v2366_v4 = vmin.f32 %v2208_v23, 0.0  ;;  %v2211_v10 = vadd.f32 %v5107_v9, %v2210_v35  ;;  %vm2334_vm4 = vcmp.gt.f32.partialorder %v2208_v23, 0.0 }
 0x2ee   : > { %v2402_v12 = vmul.f32 1.442695, %v2368_v15  ;;  %v2369_v30 = vmin.f32 %v2219_v53, 0.0  ;;  %vm2337_vm5 = vcmp.gt.f32.partialorder %v2219_v53, 0.0 }
 0x2ef   : > { %v2398_v48 = vmul.f32 1.442695, %v2366_v4  ;;  %v2367_v16 = vmin.f32 %v2211_v10, 0.0  ;;  %vm2335_vm6 = vcmp.gt.f32.partialorder %v2211_v10, 0.0 }
 0x2f0   : > { %3515 = vpow2.f32 %v2402_v12  ;;  %v2404_v24 = vmul.f32 1.442695, %v2369_v30 }
 0x2f1   : > { %3517 = vpow2.f32 %v2398_v48  ;;  %v2400_v28 = vmul.f32 1.442695, %v2367_v16 }
 0x2f2   : > { %3519 = vpow2.f32 %v2404_v24 }
 0x2f3   : > { %3521 = vpow2.f32 %v2400_v28 }
 0x2f5   : > { %v3262_v3 = vpop.f32.mrb[68].mxu0 }
 0x2f6   : > { %v5114_v19 = vadd.f32 %v3262_v3, %v5107_v9  ;;  %v2223_v29 = vpop.f32.mrb[69].mxu0 }
 0x2f7   : > { %v5117_v34 = vadd.f32 %v5107_v9, %v2223_v29  ;;  %v3263_v26 = vpop.f32.mrb[70].mxu0 }
 0x2f8   : > { %v2372_v49 = vmin.f32 %v5114_v19, 0.0  ;;  %v5121_v63 = vadd.f32 %v3263_v26, %v5107_v9  ;;  %v2226_v20 = vpop.f32.mrb[71].mxu0  ;;  %vm2340_vm7 = vcmp.gt.f32.partialorder %v5114_v19, 0.0 }
 0x2f9   : > { %v2370_v7 = vmin.f32 %v5117_v34, 0.0  ;;  %v5125_v25 = vadd.f32 %v5107_v9, %v2226_v20  ;;  %vm2338_vm8 = vcmp.gt.f32.partialorder %v5117_v34, 0.0 }
 0x2fa   : > { %v2410_v39 = vmul.f32 1.442695, %v2372_v49  ;;  %v2373_v6 = vmin.f32 %v5121_v63, 0.0  ;;  %v3516_v17 = vpop.eup %3515  ;;  %vm2341_vm9 = vcmp.gt.f32.partialorder %v5121_v63, 0.0 }
 0x2fb   : > { %v2406_v62 = vmul.f32 1.442695, %v2370_v7  ;;  %v2371_v37 = vmin.f32 %v5125_v25, 0.0  ;;  %v3518_v56 = vpop.eup %3517  ;;  %v2979_v5 = vadd.f32 -1.0, %v3516_v17  ;;  %vm2339_vm10 = vcmp.gt.f32.partialorder %v5125_v25, 0.0 }
 0x2fc   : > { %3523 = vpow2.f32 %v2410_v39  ;;  %v2412_v52 = vmul.f32 1.442695, %v2373_v6  ;;  %v3520_v21 = vpop.eup %3519  ;;  %v2977_v57 = vadd.f32 -1.0, %v3518_v56 }
 0x2fd   : > { %3525 = vpow2.f32 %v2406_v62  ;;  %v2408_v32 = vmul.f32 1.442695, %v2371_v37  ;;  %v3522_v0 = vpop.eup %3521  ;;  %v2980_v36 = vadd.f32 -1.0, %v3520_v21  ;;  %v5132_v38 = vsel %vm2336_vm3, %v2216_v55, %v2979_v5 }
 0x2fe   : > { %3527 = vpow2.f32 %v2412_v52  ;;  %v3266_v11 = vpop.f32.mrb[72].mxu0  ;;  %v2978_v31 = vadd.f32 -1.0, %v3522_v0  ;;  %v5139_v42 = vsel %vm2334_vm4, %v2208_v23, %v2977_v57 }
 0x2ff   : > { %3529 = vpow2.f32 %v2408_v32  ;;  %v5130_v13 = vadd.f32 %v3266_v11, %v5107_v9  ;;  %v2239_v40 = vpop.f32.mrb[73].mxu0  ;;  %v5134_v27 = vsel %vm2337_vm5, %v2219_v53, %v2980_v36 }
 0x300   : > { %v5137_v33 = vadd.f32 %v5107_v9, %v2239_v40  ;;  %v3267_v61 = vpop.f32.mrb[74].mxu0  ;;  %v3297_v47 = vpack.c.bf16 %v5134_v27, %v5132_v38  ;;  %v5143_v18 = vsel %vm2335_vm6, %v2211_v10, %v2978_v31 }
 0x301   : > { %v2376_v43 = vmin.f32 %v5130_v13, 0.0  ;;  %v2242_v59 = vpop.f32.mrb[75].mxu0  ;;  %v3291_v2 = vpack.c.bf16 %v5143_v18, %v5139_v42  ;;  %v5150_v22 = vadd.f32 %v3267_v61, %v5107_v9  ;;  %vm2344_vm11 = vcmp.gt.f32.partialorder %v5130_v13, 0.0 }
 0x302   : > { %v2374_v46 = vmin.f32 %v5137_v33, 0.0  ;;  %v5153_v1 = vadd.f32 %v5107_v9, %v2242_v59  ;;  %vm2342_vm12 = vcmp.gt.f32.partialorder %v5137_v33, 0.0 }
 0x303   : > { %v2418_v58 = vmul.f32 1.442695, %v2376_v43  ;;  %v2377_v14 = vmin.f32 %v5150_v22, 0.0  ;;  %vm2345_vm13 = vcmp.gt.f32.partialorder %v5150_v22, 0.0 }
 0x304   : > { %v2414_v60 = vmul.f32 1.442695, %v2374_v46  ;;  %v2375_v41 = vmin.f32 %v5153_v1, 0.0  ;;  %vm2343_vm14 = vcmp.gt.f32.partialorder %v5153_v1, 0.0 }
 0x305   : > { %3531 = vpow2.f32 %v2418_v58  ;;  %v2420_v8 = vmul.f32 1.442695, %v2377_v14 }
 0x306   : > { %v3524_v50 = vpop.eup %3523  ;;  %3533 = vpow2.f32 %v2414_v60  ;;  %v2416_v45 = vmul.f32 1.442695, %v2375_v41 }
 0x307   : > { %v3526_v44 = vpop.eup %3525  ;;  %v2983_v55 = vadd.f32 -1.0, %v3524_v50  ;;  %v3270_v23 = vpop.f32.mrb[76].mxu0  ;;  %3535 = vpow2.f32 %v2420_v8 }
 0x308   : > { %v3528_v54 = vpop.eup %3527  ;;  %v2981_v15 = vadd.f32 -1.0, %v3526_v44  ;;  %v5160_v53 = vadd.f32 %v3270_v23, %v5107_v9  ;;  %v2255_v35 = vpop.f32.mrb[77].mxu0  ;;  %3537 = vpow2.f32 %v2416_v45 }
 0x309   : > { %v3530_v4 = vpop.eup %3529  ;;  %v2984_v10 = vadd.f32 -1.0, %v3528_v54  ;;  %v5164_v12 = vadd.f32 %v5107_v9, %v2255_v35  ;;  %v3271_v30 = vpop.f32.mrb[78].mxu0  ;;  %v5169_v48 = vsel %vm2340_vm7, %v5114_v19, %v2983_v55 }
 0x30a   : > { %v2982_v16 = vadd.f32 -1.0, %v3530_v4  ;;  %v2380_v24 = vmin.f32 %v5160_v53, 0.0  ;;  %v2258_v28 = vpop.f32.mrb[79].mxu0  ;;  %v5176_v3 = vsel %vm2338_vm8, %v5117_v34, %v2981_v15  ;;  %v5183_v49 = vadd.f32 %v3271_v30, %v5107_v9  ;;  %vm5302_vm8 = vmpackc.low %vm1492_vm0, %vm1492_vm0 }
 0x30b   : > { %v5179_v29 = vsel %vm2341_vm9, %v5121_v63, %v2984_v10  ;;  %v2378_v26 = vmin.f32 %v5164_v12, 0.0  ;;  %v5191_v39 = vadd.f32 %v5107_v9, %v2258_v28  ;;  %vm2348_vm15 = vcmp.gt.f32.partialorder %v5160_v53, 0.0 }
 0x30c   : > { %v3309_v19 = vpack.c.bf16 %v5179_v29, %v5169_v48  ;;  %v5188_v20 = vsel %vm2339_vm10, %v5125_v25, %v2982_v16  ;;  %v2426_v7 = vmul.f32 1.442695, %v2380_v24  ;;  %v2381_v6 = vmin.f32 %v5183_v49, 0.0 }
 0x30d   : > { %v3303_v34 = vpack.c.bf16 %v5188_v20, %v5176_v3  ;;  %v2422_v63 = vmul.f32 1.442695, %v2378_v26  ;;  %v2379_v17 = vmin.f32 %v5191_v39, 0.0  ;;  %vm2346_vm1 = vcmp.gt.f32.partialorder %v5164_v12, 0.0 }
 0x30e   : > { %3539 = vpow2.f32 %v2426_v7  ;;  %v2428_v37 = vmul.f32 1.442695, %v2381_v6  ;;  %vm2349_vm2 = vcmp.gt.f32.partialorder %v5183_v49, 0.0  ;;  %vm2347_vm3 = vcmp.gt.f32.partialorder %v5191_v39, 0.0 }
 0x30f   : > { %v3532_v62 = vpop.eup %3531  ;;  %3541 = vpow2.f32 %v2422_v63  ;;  %v2424_v5 = vmul.f32 1.442695, %v2379_v17  ;;  %v2528_v48 = vstv %s2527_s14 }
 0x310   : > { %v3534_v56 = vpop.eup %3533  ;;  %v3274_v25 = vpop.f32.mrb[80].mxu0  ;;  %v2987_v52 = vadd.f32 -1.0, %v3532_v62  ;;  %3543 = vpow2.f32 %v2428_v37 }
 0x311   : > { %v5198_v21 = vadd.f32 %v3274_v25, %v5107_v9  ;;  %v2271_v57 = vpop.f32.mrb[81].mxu0  ;;  %v3536_v32 = vpop.eup %3535  ;;  %v2985_v0 = vadd.f32 -1.0, %v3534_v56  ;;  %3545 = vpow2.f32 %v2424_v5 }
 0x312   : > { %v5202_v36 = vadd.f32 %v5107_v9, %v2271_v57  ;;  %v3275_v11 = vpop.f32.mrb[82].mxu0  ;;  %v3538_v31 = vpop.eup %3537  ;;  %v2988_v40 = vadd.f32 -1.0, %v3536_v32  ;;  %v5213_v60 = vsel %vm2344_vm11, %v5130_v13, %v2987_v52 }
 0x313   : > { %v2384_v61 = vmin.f32 %v5198_v21, 0.0  ;;  %v2274_v43 = vpop.f32.mrb[83].mxu0  ;;  %v2986_v59 = vadd.f32 -1.0, %v3538_v31  ;;  %v5210_v58 = vadd.f32 %v3275_v11, %v5107_v9  ;;  %v5222_v8 = vsel %vm2342_vm12, %v5137_v33, %v2985_v0 }
 0x314   : > { %v2382_v46 = vmin.f32 %v5202_v36, 0.0  ;;  %v5216_v14 = vsel %vm2345_vm13, %v5150_v22, %v2988_v40  ;;  %v5219_v50 = vadd.f32 %v5107_v9, %v2274_v43  ;;  %vm2352_vm4 = vcmp.gt.f32.partialorder %v5198_v21, 0.0 }
 0x315   : > { %v2434_v41 = vmul.f32 1.442695, %v2384_v61  ;;  %v3321_v44 = vpack.c.bf16 %v5216_v14, %v5213_v60  ;;  %v5227_v55 = vsel %vm2343_vm14, %v5153_v1, %v2986_v59  ;;  %v2385_v22 = vmin.f32 %v5210_v58, 0.0 }
 0x316   : > { %v2430_v45 = vmul.f32 1.442695, %v2382_v46  ;;  %v3315_v13 = vpack.c.bf16 %v5227_v55, %v5222_v8  ;;  %v2383_v54 = vmin.f32 %v5219_v50, 0.0  ;;  %vm2350_vm5 = vcmp.gt.f32.partialorder %v5202_v36, 0.0 }
 0x317   : > { %3547 = vpow2.f32 %v2434_v41  ;;  %v2436_v35 = vmul.f32 1.442695, %v2385_v22  ;;  %vm2353_vm6 = vcmp.gt.f32.partialorder %v5210_v58, 0.0  ;;  %vm2351_vm7 = vcmp.gt.f32.partialorder %v5219_v50, 0.0 }
 0x318   : > { %v3540_v23 = vpop.eup %3539  ;;  %3549 = vpow2.f32 %v2430_v45  ;;  %v3278_v15 = vpop.f32.mrb[84].mxu0  ;;  %v2432_v30 = vmul.f32 1.442695, %v2383_v54 }
 0x319   : > { %v3542_v33 = vpop.eup %3541  ;;  %v5234_v4 = vadd.f32 %v3278_v15, %v5107_v9  ;;  %v2287_v10 = vpop.f32.mrb[85].mxu0  ;;  %v2991_v1 = vadd.f32 -1.0, %v3540_v23  ;;  %3551 = vpow2.f32 %v2436_v35 }
 0x31a   : > { %v5237_v16 = vadd.f32 %v5107_v9, %v2287_v10  ;;  %v3279_v24 = vpop.f32.mrb[86].mxu0  ;;  %v3544_v28 = vpop.eup %3543  ;;  %v2989_v26 = vadd.f32 -1.0, %v3542_v33  ;;  %3553 = vpow2.f32 %v2432_v30 }
 0x31b   : > { %v2388_v7 = vmin.f32 %v5234_v4, 0.0  ;;  %v2290_v63 = vpop.f32.mrb[87].mxu0  ;;  %v3546_v6 = vpop.eup %3545  ;;  %v2992_v17 = vadd.f32 -1.0, %v3544_v28  ;;  %v5245_v5 = vadd.f32 %v3279_v24, %v5107_v9  ;;  %v5248_v25 = vsel %vm2348_vm15, %v5160_v53, %v2991_v1 }
 0x31c   : > { %v2990_v62 = vadd.f32 -1.0, %v3546_v6  ;;  %v2386_v56 = vmin.f32 %v5237_v16, 0.0  ;;  %v5255_v57 = vadd.f32 %v5107_v9, %v2290_v63  ;;  %v5258_v32 = vsel %vm2346_vm1, %v5164_v12, %v2989_v26 }
 0x31d   : > { %v2442_v37 = vmul.f32 1.442695, %v2388_v7  ;;  %v5251_v52 = vsel %vm2349_vm2, %v5183_v49, %v2992_v17  ;;  %v2389_v49 = vmin.f32 %v5245_v5, 0.0  ;;  %vm2356_vm9 = vcmp.gt.f32.partialorder %v5234_v4, 0.0 }
 0x31e   : > { %v3333_v0 = vpack.c.bf16 %v5251_v52, %v5248_v25  ;;  %v5263_v11 = vsel %vm2347_vm3, %v5191_v39, %v2990_v62  ;;  %v2438_v31 = vmul.f32 1.442695, %v2386_v56  ;;  %v2387_v43 = vmin.f32 %v5255_v57, 0.0 }
 0x31f   : > { %v3327_v53 = vpack.c.bf16 %v5263_v11, %v5258_v32  ;;  %3555 = vpow2.f32 %v2442_v37  ;;  %v2444_v41 = vmul.f32 1.442695, %v2389_v49  ;;  %vm2354_vm10 = vcmp.gt.f32.partialorder %v5237_v16, 0.0 }
 0x320   : > { %v3282_v40 = vpop.f32.mrb[88].mxu0  ;;  %3557 = vpow2.f32 %v2438_v31  ;;  %v2440_v23 = vmul.f32 1.442695, %v2387_v43  ;;  %vm2357_vm11 = vcmp.gt.f32.partialorder %v5245_v5, 0.0  ;;  %vm2355_vm12 = vcmp.gt.f32.partialorder %v5255_v57, 0.0 }
 0x321   : > { %v3548_v61 = vpop.eup %3547  ;;  %v5270_v12 = vadd.f32 %v3282_v40, %v5107_v9  ;;  %v2303_v59 = vpop.f32.mrb[89].mxu0  ;;  %3559 = vpow2.f32 %v2444_v41 }
 0x322   : > { %v3550_v46 = vpop.eup %3549  ;;  %v5273_v39 = vadd.f32 %v5107_v9, %v2303_v59  ;;  %v3283_v45 = vpop.f32.mrb[90].mxu0  ;;  %v2995_v22 = vadd.f32 -1.0, %v3548_v61  ;;  %3561 = vpow2.f32 %v2440_v23 }
 0x323   : > { %v2392_v54 = vmin.f32 %v5270_v12, 0.0  ;;  %v2306_v15 = vpop.f32.mrb[91].mxu0  ;;  %v2993_v33 = vadd.f32 -1.0, %v3550_v46  ;;  %v3552_v10 = vpop.eup %3551  ;;  %v5281_v30 = vadd.f32 %v3283_v45, %v5107_v9  ;;  %vm2360_vm13 = vcmp.gt.f32.partialorder %v5270_v12, 0.0 }
 0x324   : > { %v2390_v35 = vmin.f32 %v5273_v39, 0.0  ;;  %v3554_v24 = vpop.eup %3553  ;;  %v2996_v28 = vadd.f32 -1.0, %v3552_v10  ;;  %v5285_v7 = vadd.f32 %v5107_v9, %v2306_v15  ;;  %v2512_v63 = vsel %vm2352_vm4, %v5198_v21, %v2995_v22 }
 0x325   : > { %v2450_v1 = vmul.f32 1.442695, %v2392_v54  ;;  %v2994_v6 = vadd.f32 -1.0, %v3554_v24  ;;  %v2393_v17 = vmin.f32 %v5281_v30, 0.0  ;;  %v2510_v62 = vsel %vm2350_vm5, %v5202_v36, %v2993_v33 }
 0x326   : > { %v2446_v26 = vmul.f32 1.442695, %v2390_v35  ;;  %v2513_v37 = vsel %vm2353_vm6, %v5210_v58, %v2996_v28  ;;  %v2391_v56 = vmin.f32 %v5285_v7, 0.0  ;;  %vm2361_vm14 = vcmp.gt.f32.partialorder %v5281_v30, 0.0 }
 0x327   : > { %3563 = vpow2.f32 %v2450_v1  ;;  %v3294_v49 = vpack.c.bf16 %v2513_v37, %v2512_v63  ;;  %v2511_v40 = vsel %vm2351_vm7, %v5219_v50, %v2994_v6  ;;  %v2452_v61 = vmul.f32 1.442695, %v2393_v17 }
 0x328   : > { %3565 = vpow2.f32 %v2446_v26  ;;  %v3286_v31 = vpop.f32.mrb[92].mxu0  ;;  %v3288_v58 = vpack.c.bf16 %v2511_v40, %v2510_v62  ;;  %v2448_v46 = vmul.f32 1.442695, %v2391_v56  ;;  %vm2358_vm15 = vcmp.gt.f32.partialorder %v5273_v39, 0.0 }
 0x329   : > { %v5298_v21 = vadd.f32 %v3286_v31, %v5107_v9  ;;  %v2319_v43 = vpop.f32.mrb[93].mxu0  ;;  %v3556_v36 = vpop.eup %3555  ;;  %3567 = vpow2.f32 %v2452_v61  ;;  %vm2359_vm1 = vcmp.gt.f32.partialorder %v5285_v7, 0.0 }
 0x32a   : > { %v5307_v41 = vadd.f32 %v5107_v9, %v2319_v43  ;;  %v3287_v45 = vpop.f32.mrb[94].mxu0  ;;  %v3558_v22 = vpop.eup %3557  ;;  %3569 = vpow2.f32 %v2448_v46  ;;  %3290 = vmatprep.subr.msk.bf16.mxu1 %vm5302_vm8, %v3288_v58  ;;  %v2999_v15 = vadd.f32 -1.0, %v3556_v36 }
 0x32b   : > { %v2396_v50 = vmin.f32 %v5298_v21, 0.0  ;;  %v5311_v23 = vadd.f32 %v3287_v45, %v5107_v9  ;;  %v2322_v54 = vpop.f32.mrb[95].mxu0  ;;  %3293 = vmatpush3.bf16.xpose.msk.msra.mxu1 %vm5302_vm8, %v3291_v2  ;;  %v3560_v1 = vpop.eup %3559  ;;  %v2997_v24 = vadd.f32 -1.0, %v3558_v22  ;;  %vm2364_vm2 = vcmp.gt.f32.partialorder %v5298_v21, 0.0 }
 0x32c   : > { %v2394_v35 = vmin.f32 %v5307_v41, 0.0  ;;  %v2323_v28 = vadd.f32 %v5107_v9, %v2322_v54  ;;  %3296 = vmatprep.subr.msk.bf16.mxu1 %vm5302_vm8, %v3294_v49  ;;  %v3562_v26 = vpop.eup %3561  ;;  %v3000_v63 = vadd.f32 -1.0, %v3560_v1  ;;  %v2516_v62 = vsel %vm2356_vm9, %v5234_v4, %v2999_v15 }
 0x32d   : > { %v2458_v33 = vmul.f32 1.442695, %v2396_v50  ;;  %v2397_v10 = vmin.f32 %v5311_v23, 0.0  ;;  %v2998_v42 = vadd.f32 -1.0, %v3562_v26  ;;  %v2514_v56 = vsel %vm2354_vm10, %v5237_v16, %v2997_v24 }
 0x32e   : > { %v2454_v6 = vmul.f32 1.442695, %v2394_v35  ;;  %v2395_v18 = vmin.f32 %v2323_v28, 0.0  ;;  %v2517_v37 = vsel %vm2357_vm11, %v5245_v5, %v3000_v63  ;;  %vm2365_vm3 = vcmp.gt.f32.partialorder %v5311_v23, 0.0 }
 0x32f   : > { %3571 = vpow2.f32 %v2458_v33  ;;  %v2460_v17 = vmul.f32 1.442695, %v2397_v10  ;;  %v3306_v31 = vpack.c.bf16 %v2517_v37, %v2516_v62  ;;  %v2515_v49 = vsel %vm2355_vm12, %v5255_v57, %v2998_v42 }
 0x330   : > { %3573 = vpow2.f32 %v2454_v6  ;;  %v3300_v40 = vpack.c.bf16 %v2515_v49, %v2514_v56  ;;  %v2456_v61 = vmul.f32 1.442695, %v2395_v18  ;;  %vm2362_vm4 = vcmp.gt.f32.partialorder %v5307_v41, 0.0 }
 0x331   : > { %v3564_v2 = vpop.eup %3563  ;;  %3575 = vpow2.f32 %v2460_v17  ;;  %vm2363_vm5 = vcmp.gt.f32.partialorder %v2323_v28, 0.0 }
 0x332   : > { %v3566_v9 = vpop.eup %3565  ;;  %v3003_v43 = vadd.f32 -1.0, %v3564_v2  ;;  %3577 = vpow2.f32 %v2456_v61 }
 0x333   : > { %v3568_v36 = vpop.eup %3567  ;;  %v3001_v58 = vadd.f32 -1.0, %v3566_v9  ;;  %3299 = vmatpush3.bf16.xpose.msk.msra.mxu1 %vm5302_vm8, %v3297_v47 }
 0x334   : > { %v3570_v4 = vpop.eup %3569  ;;  %v3004_v5 = vadd.f32 -1.0, %v3568_v36  ;;  %3302 = vmatprep.subr.msk.bf16.mxu1 %vm5302_vm8, %v3300_v40  ;;  %v2520_v57 = vsel %vm2360_vm13, %v5270_v12, %v3003_v43 }
 0x335   : > { %v3002_v16 = vadd.f32 -1.0, %v3570_v4  ;;  %v2518_v27 = vsel %vm2358_vm15, %v5273_v39, %v3001_v58 }
 0x336   : > { %v2521_v46 = vsel %vm2361_vm14, %v5281_v30, %v3004_v5 }
 0x337   : > { %v3318_v47 = vpack.c.bf16 %v2521_v46, %v2520_v57  ;;  %v2519_v45 = vsel %vm2359_vm1, %v5285_v7, %v3002_v16 }
 0x338   : > { %v3312_v22 = vpack.c.bf16 %v2519_v45, %v2518_v27 }
 0x339   : > { %v3572_v38 = vpop.eup %3571 }
 0x33a   : > { %v3574_v50 = vpop.eup %3573  ;;  %v3007_v54 = vadd.f32 -1.0, %v3572_v38 }
 0x33b   : > { %v3576_v15 = vpop.eup %3575  ;;  %3305 = vmatpush3.bf16.xpose.msk.msra.mxu1 %vm5302_vm8, %v3303_v34  ;;  %v3005_v12 = vadd.f32 -1.0, %v3574_v50 }
 0x33c   : > { %v3008_v33 = vadd.f32 -1.0, %v3576_v15  ;;  %3308 = vmatprep.subr.msk.bf16.mxu1 %vm5302_vm8, %v3306_v31  ;;  %v3578_v39 = vpop.eup %3577  ;;  %v2524_v30 = vsel %vm2364_vm2, %v5298_v21, %v3007_v54 }
 0x33d   : > { %v3006_v10 = vadd.f32 -1.0, %v3578_v39  ;;  %v2522_v3 = vsel %vm2362_vm4, %v5307_v41, %v3005_v12 }
 0x33e   : > { %v2525_v7 = vsel %vm2365_vm3, %v5311_v23, %v3008_v33 }
 0x33f   : > { %v3330_v35 = vpack.c.bf16 %v2525_v7, %v2524_v30  ;;  %v2523_v20 = vsel %vm2363_vm5, %v2323_v28, %v3006_v10 }
 0x340   : > { %v3324_v34 = vpack.c.bf16 %v2523_v20, %v2522_v3 }
 0x343   : > { %3311 = vmatpush3.bf16.xpose.msk.msra.mxu1 %vm5302_vm8, %v3309_v19 }
 0x344   : > { %3314 = vmatprep.subr.msk.bf16.mxu1 %vm5302_vm8, %v3312_v22 }
 0x34b   : > { %3317 = vmatpush3.bf16.xpose.msk.msra.mxu1 %vm5302_vm8, %v3315_v13 }
 0x34c   : > { %3320 = vmatprep.subr.msk.bf16.mxu1 %vm5302_vm8, %v3318_v47 }
 0x353   : > { %3323 = vmatpush3.bf16.xpose.msk.msra.mxu1 %vm5302_vm8, %v3321_v44 }
 0x354   : > { %3326 = vmatprep.subr.msk.bf16.mxu1 %vm5302_vm8, %v3324_v34 }
 0x35b   : > { %3329 = vmatpush3.bf16.xpose.msk.msra.mxu1 %vm5302_vm8, %v3327_v53  ;;  %v2717_v53 = vlaneseq }
 0x35c   : > { %3332 = vmatprep.subr.msk.bf16.mxu1 %vm5302_vm8, %v3330_v35 }
 0x35d   : > { %v2718_v59 = vshrl.u32 %v2717_v53, 7 }
 0x363   : > { %3335 = vmatpush3.bf16.xpose.msk.msra.mxu1 %vm5302_vm8, %v3333_v0 }
 0x36a   : > { %3151 = vmatmul.mubr.msk.f32.vlgmr.msra.gmra.mrb[64].mxu1 %vm1492_vm0, %v5100_v51  ;;  %v3756_v51 = vmov 1966171168   ;;  %vm2731_vm0 = vcmp.lt.s32.totalorder %v2717_v53, 256 }
 0x36b   : > { %v2715_v11 = vunpack.c.l.s4 %v3756_v51 }
 0x36d   : > { %v2716_v21 = vunpack.c.0.s8 %v2715_v11 }
 0x36f   : > { %v2719_v23 = vsub.s32 %v2716_v21, %v2718_v59 }
 0x43d   : > { %v2694_v29 = vpop.f32.mrb[64].mxu1 }
 0x43e   : > { %v2695_v19 = vadd.f32 %v2694_v29, %v2528_v48  ;;  %v2696_v60 = vpop.f32.mrb[65].mxu1 }
 0x43f   : > { %v2697_v14 = vadd.f32 %v2696_v60, %v2528_v48 }
 0x440   : > { %v2699_v8 = vsub.f32 0.0, %v2695_v19 }
 0x441   : > { %v2700_v44 = vsub.f32 0.0, %v2697_v14 }
 0x442   : > { %v2701_v55 = vmul.f32 1.442695, %v2699_v8 }
 0x443   : > { %v2703_v13 = vmul.f32 1.442695, %v2700_v44 }
 0x444   : > { %3579 = vpow2.f32 %v2701_v55 }
 0x445   : > { %3581 = vpow2.f32 %v2703_v13 }
 0x44e   : > { %v3580_v25 = vpop.eup %3579 }
 0x44f   : > { %v3582_v52 = vpop.eup %3581  ;;  %v2705_v32 = vadd.f32 1.0, %v3580_v25 }
 0x450   : > { %v2706_v0 = vadd.f32 1.0, %v3582_v52 }
 0x451   : > { %3583 = vrcp.f32 %v2705_v32 }
 0x452   : > { %3585 = vrcp.f32 %v2706_v0 }
 0x45b   : > { %v3584_v41 = vpop.eup %3583 }
 0x45c   : > { %v3586_v1 = vpop.eup %3585 }
 0x45d   : > { %v2713_v24 = vcombine.low %v3584_v41, %v3586_v1  ;;  %2741 = sbr.rel (!%p5492_p2) target bundleno = 1151 (0x47f), region = 80 }
 0x45f   : > { %v2720_v28 = vrot.slane %v2713_v24, %v2719_v23 }
 0x461   : > { %v2727_v26 = vrot.slane %v2720_v28, %v2719_v23 }
 0x463   : > { %2733 = vst.msk [vmem:[%s504_s28] sm:$0x3] %vm2731_vm0, %v2727_v26 }
 0x464   : > { %s5505_s30 = smov (!%p2744_p3, %s2743_s30), 2 }
 0x465   : > { %s5401_s18 = sshll.u32 %s5505_s30, 4 }
 0x466   : > { %s2748_s26 = ssub.s32 32, %s5401_s18 }
 0x467   : > { %2749 = vsyncadd %s2735_s1, %s2748_s26  ;;  %p3045_p13 = scmp.ne.s32.totalorder %s5401_s18, 0  ;;  %s5411_s8 = scalar_lea.hbm %s5464_s11, %s4035_s25 }
 0x468   : > { %s2754_s0 = sshll.u32 %s504_s28, 4  ;;  %s3757_s19 = smov [#allocation10]   ;;  %s2755_s0 = int_to_ptr.vmem [resolvable:$true] %s2754_s0 }
 0x469   : > { %s3671_s20 = scalar_lea.vmem %s2755_s0, %s5401_s18  ;;  %s3675_s29 = sshll.u32 %s3757_s19, 4  ;;  %s3676_s29 = int_to_ptr.vmem [resolvable:$false] %s3675_s29 }
 0x46a   : > { %p3672_p7 = scmp.ne.s32.totalorder %s2755_s0, %s3671_s20  ;;  %s3677_s16 = scalar_lea.vmem %s3676_s29, 64 }
 0x46b   : > { %p3678_p1 = scmp.lt.s32.totalorder %s2755_s0, %s3676_s29  ;;  %p3679_p4 = scmp.lt.s32.totalorder %s3677_s16, %s3671_s20 }
 0x46c   : > { %p3673_p8 = pnand %p3672_p7, %p3045_p13 }
 0x46d   : > { %p3680_p10 = por %p3679_p4, %p3678_p1 }
 0x46e   : > { %p3674_p9 = pneg %p3673_p8 }
 0x470   : > { %p3681_p5 = pnand %p3680_p10, %p3674_p9 }
 0x472   : > { %3684 = shalt.err (!%p3681_p5)
}
 0x473   : > { %s3685_s25 = scalar_lea.hbm %s5411_s8, %s5401_s18  ;;  %s3689_s17 = scalar_lea.hbm %s5464_s11, 48 }
 0x474   : > { %p3686_p6 = scmp.ne.s32.totalorder %s5411_s8, %s3685_s25  ;;  %p3690_p2 = scmp.lt.u32.totalorder %s5411_s8, %s5464_s11 }
 0x475   : > { %p3691_p3 = scmp.lt.u32.totalorder %s3689_s17, %s3685_s25  ;;  %p3693_p8 = scmp.lt.u32.totalorder %s3685_s25, %s5411_s8 }
 0x476   : > { %p3687_p11 = pnand %p3686_p6, %p3045_p13 }
 0x477   : > { %p3692_p7 = por %p3691_p3, %p3690_p2 }
 0x478   : > { %p3688_p12 = pneg %p3687_p11 }
 0x479   : > { %p3694_p9 = por %p3693_p8, %p3692_p7 }
 0x47b   : > { %p3695_p1 = pnand %p3694_p9, %p3688_p12 }
 0x47d   : > { %3698 = shalt.err (!%p3695_p1)
}
 0x47e   : > { %2757 = dma.vmem_to_hbm [thread:$0]  (%p3045_p13), %s2755_s0, %s5401_s18, %s5411_s8, %s2735_s1  }
 0x47f PF: > { %s5493_s30 = sld [smem:[#allocation17_spill]]  ;;  %s2766_s26 = sand.u32 1, %s3733_s21  }
 0x480   : > { %s2767_s27 = scalar_lea.sflag [#allocation6], %s2766_s26 }
 0x485   : > { %p5494_p4 = scmp.ne.s32.totalorder %s5493_s30, 0 }
 0x487   : > { %p3361_p10 = pnand %p2871_p0, %p5494_p4 }
 0x489   : > { %3728 = dma.done.wait (!%p3361_p10), %s2767_s27, 32  }
 0x48a   : > { %3730 = vsyncadd (!%p3361_p10), %s2767_s27, 4294967264  ;;  %s5495_s24 = sld [smem:[#allocation15_spill]]  ;;  %s5496_s12 = sld [smem:[#allocation16_spill]] }
 0x48b   : > { %s5497_s21 = smov %s3737_s22  ;;  %s5498_s22 = smov %s3741_s23 }
 0x490   : > { %p29_p5 = scmp.ge.s32.totalorder %s5495_s24, 4   ;;  %s5499_s23 = smov %s5496_s12 }
 0x492   :  { %31 = sbr.rel (!%p29_p5) target bundleno = 12 (0xc), region = 129 }
 0x499   :  { %2772 = vsyncpa [#allocation5], 1 }
 0x49a   :  { %2774 = vsyncpa [#allocation5 + $0x1], 1 }
 0x49b   :  { %2775 = vsyncpa [#allocation8], 1 }
 0x49c   :  { %2777 = vsyncpa [#allocation8 + $0x1], 1 }
 0x49d   :  { %2778 = vsyncpa [#allocation6], 1 }
 0x49e   :  { %2780 = vsyncpa [#allocation6 + $0x1], 1 }

</bundles_post_ra>
